<compile_context>
chip_gen: v7x
topology: tpu7x:2x2x1
jax: 0.10.0
libtpu: 0.0.40
codegen_flags: <defaults>
</compile_context>

<pallas_src>
import jax
import jax.numpy as jnp
from jax.experimental import pallas as pl
from jax.experimental.pallas import tpu as pltpu


def _round_up(x, m):
    return (x + m - 1) // m * m


def _pick_tm(batch, tm_max):
    # Small batches: one block whose first dim equals the full array dim
    # (always a legal block shape; no padding or masking needed).
    if batch <= 32:
        return batch
    # Otherwise split the batch into at least two tiles (rows a multiple of 16
    # so bf16/f32 sublane tiling is clean) so v7x's two TensorCores both get
    # work; cap at tm_max to bound VMEM.
    tm = min(tm_max, _round_up(-(-batch // 2), 16))
    return tm if tm < batch else batch


def mlp_encoder_kernel(x_ref, w1_ref, b1_ref, w2_ref, b2_ref, out_ref):
    # x_ref:  (TM, in_dim)    f32  VMEM batch tile (cast to bf16 on the VPU)
    # w1_ref: (in_dim, h)     bf16 VMEM, resident across the grid
    # b1_ref: (1, h)          f32
    # w2_ref: (h, out_dim)    bf16 VMEM, resident across the grid
    # b2_ref: (1, out_dim)    f32
    # out_ref:(TM, out_dim)   f32
    x = x_ref[...].astype(jnp.bfloat16)
    # lin1 + ReLU: bf16 operands on the MXU, f32 accumulation & epilogue.
    h = jnp.dot(x, w1_ref[...], preferred_element_type=jnp.float32)
    h = jnp.maximum(h + b1_ref[...], 0.0)
    # lin2: cast activations back to bf16 for a single-pass MXU matmul.
    o = jnp.dot(h.astype(jnp.bfloat16), w2_ref[...],
                preferred_element_type=jnp.float32)
    out_ref[...] = (o + b2_ref[...]).astype(out_ref.dtype)


def prepare_params(w1, b1, w2, b2):
    """One-time parameter prep (do at init / checkpoint load, NOT per call).

    w1: (in_dim, h_dim), w2: (h_dim, out_dim) -- nn.Linear weights
    pre-transposed.  Weights stream as bf16; biases stay f32."""
    return (w1.astype(jnp.bfloat16),
            b1.reshape(1, -1).astype(jnp.float32),
            w2.astype(jnp.bfloat16),
            b2.reshape(1, -1).astype(jnp.float32))


def mlp_encoder(x, params, *, tm_max=1024):
    """Forward pass. x: (B, ...) flattened to (B, in_dim). Returns (B, out_dim) f32."""
    w1b, b1f, w2b, b2f = params
    batch = x.shape[0]
    x2d = x.reshape(batch, -1)                     # torch.flatten(x, 1)
    in_dim = x2d.shape[1]
    h_dim = w1b.shape[1]
    out_dim = w2b.shape[1]
    assert w1b.shape == (in_dim, h_dim) and w2b.shape == (h_dim, out_dim)

    tm = _pick_tm(batch, tm_max)
    grid = (pl.cdiv(batch, tm),)                   # partial last tile is masked

    flops = 2 * batch * (in_dim * h_dim + h_dim * out_dim)
    bytes_accessed = (x2d.size * x2d.dtype.itemsize
                      + w1b.size * 2 + w2b.size * 2
                      + b1f.size * 4 + b2f.size * 4
                      + batch * out_dim * 4)

    return pl.pallas_call(
        mlp_encoder_kernel,
        out_shape=jax.ShapeDtypeStruct((batch, out_dim), jnp.float32),
        grid=grid,
        in_specs=[
            pl.BlockSpec((tm, in_dim), lambda i: (i, 0)),      # batch-tiled x
            pl.BlockSpec((in_dim, h_dim), lambda i: (0, 0)),   # W1 resident
            pl.BlockSpec((1, h_dim), lambda i: (0, 0)),        # b1 resident
            pl.BlockSpec((h_dim, out_dim), lambda i: (0, 0)),  # W2 resident
            pl.BlockSpec((1, out_dim), lambda i: (0, 0)),      # b2 resident
        ],
        out_specs=pl.BlockSpec((tm, out_dim), lambda i: (i, 0)),
        compiler_params=pltpu.CompilerParams(
            dimension_semantics=("parallel",),
            vmem_limit_bytes=40 * 1024 * 1024),
        cost_estimate=pl.CostEstimate(
            flops=flops, transcendentals=0, bytes_accessed=bytes_accessed),
    )(x2d, w1b, b1f, w2b, b2f)


def init_params(key, in_dim=784, h_dim=1024, out_dim=64, dtype=jnp.float32):
    """Deterministic init mirroring nn.Linear shapes.
    Weights stored transposed: (in_features, out_features)."""
    k1, k2, k3, k4 = jax.random.split(key, 4)
    lim1 = 1.0 / jnp.sqrt(in_dim)
    lim2 = 1.0 / jnp.sqrt(h_dim)
    w1 = jax.random.uniform(k1, (in_dim, h_dim), dtype, -lim1, lim1)
    b1 = jax.random.uniform(k2, (h_dim,), dtype, -lim1, lim1)
    w2 = jax.random.uniform(k3, (h_dim, out_dim), dtype, -lim2, lim2)
    b2 = jax.random.uniform(k4, (out_dim,), dtype, -lim2, lim2)
    return w1, b1, w2, b2


if __name__ == "__main__":
    key = jax.random.PRNGKey(0)
    kx, kp = jax.random.split(key)

    B, in_dim, h_dim, out_dim = 2, 784, 1024, 64
    # MNIST-like input (B, 1, 28, 28); forward flattens it to (B, 784).
    x = jax.random.normal(kx, (B, 1, 28, 28), jnp.float32)
    w1, b1, w2, b2 = init_params(kp, in_dim, h_dim, out_dim)
    params = prepare_params(w1, b1, w2, b2)     # one-time, hoisted out of fwd

    out = mlp_encoder(x, params)
    out = jax.block_until_ready(out)
    assert out.shape == (B, out_dim)

    # Pure-JAX reference with the same bf16 operand rounding (f32 accumulate),
    # so the only delta vs the kernel is accumulation-order rounding.
    x2d = x.reshape(B, -1)
    xb = x2d.astype(jnp.bfloat16).astype(jnp.float32)
    w1b = w1.astype(jnp.bfloat16).astype(jnp.float32)
    w2b = w2.astype(jnp.bfloat16).astype(jnp.float32)
    h = jnp.maximum(xb @ w1b + b1.astype(jnp.float32), 0.0)
    ref = h.astype(jnp.bfloat16).astype(jnp.float32) @ w2b + b2.astype(jnp.float32)
    assert jnp.allclose(out, ref, atol=2e-3, rtol=2e-3)

    print("KERNEL_OK")
</pallas_src>

<mosaic_0001>
module attributes {stable_mosaic.version = 11 : i64} {
  func.func @mlp_encoder_kernel(%arg0: i32, %arg1: memref<2x784xf32, #tpu.memory_space<vmem>>, %arg2: memref<784x1024xbf16, #tpu.memory_space<vmem>>, %arg3: memref<1x1024xf32, #tpu.memory_space<vmem>>, %arg4: memref<1024x64xbf16, #tpu.memory_space<vmem>>, %arg5: memref<1x64xf32, #tpu.memory_space<vmem>>, %arg6: memref<2x64xf32, #tpu.memory_space<vmem>>) attributes {dimension_semantics = [#tpu.dimension_semantics<parallel>], iteration_bounds = array<i64: 1>, scalar_prefetch = 0 : i64, scratch_operands = 0 : i64, tpu.core_type = #tpu.core_type<tc>, window_params = [{transform_indices = @transform_0, window_bounds = array<i64: 2, 784>}, {pipeline_mode = #tpu.pipeline_mode<synchronous>, transform_indices = @transform_1, window_bounds = array<i64: 784, 1024>}, {pipeline_mode = #tpu.pipeline_mode<synchronous>, transform_indices = @transform_2, window_bounds = array<i64: 1, 1024>}, {pipeline_mode = #tpu.pipeline_mode<synchronous>, transform_indices = @transform_3, window_bounds = array<i64: 1024, 64>}, {pipeline_mode = #tpu.pipeline_mode<synchronous>, transform_indices = @transform_4, window_bounds = array<i64: 1, 64>}, {transform_indices = @transform_5, window_bounds = array<i64: 2, 64>}]} {
    %c0 = arith.constant 0 : index
    %c0_0 = arith.constant 0 : index
    %0 = vector.load %arg1[%c0, %c0_0] : memref<2x784xf32, #tpu.memory_space<vmem>>, vector<2x784xf32>
    %1 = arith.truncf %0 : vector<2x784xf32> to vector<2x784xbf16>
    %c0_1 = arith.constant 0 : index
    %c0_2 = arith.constant 0 : index
    %2 = vector.load %arg2[%c0_1, %c0_2] : memref<784x1024xbf16, #tpu.memory_space<vmem>>, vector<784x1024xbf16>
    %cst = arith.constant dense<0.000000e+00> : vector<2x1024xf32>
    %3 = tpu.matmul %1, %2, %cst {dimension_numbers = #tpu.dot_dimension_numbers<[1], [0], [0], [1], [0, 0, 1, 1], [], []>} : vector<2x784xbf16>, vector<784x1024xbf16>, vector<2x1024xf32> -> vector<2x1024xf32>
    %c0_3 = arith.constant 0 : index
    %c0_4 = arith.constant 0 : index
    %4 = vector.load %arg3[%c0_3, %c0_4] : memref<1x1024xf32, #tpu.memory_space<vmem>>, vector<1x1024xf32>
    %5 = vector.broadcast %4 : vector<1x1024xf32> to vector<2x1024xf32>
    %6 = arith.addf %3, %5 : vector<2x1024xf32>
    %cst_5 = arith.constant 0.000000e+00 : f32
    %7 = vector.broadcast %cst_5 : f32 to vector<2x1024xf32>
    %8 = arith.maximumf %6, %7 : vector<2x1024xf32>
    %9 = arith.truncf %8 : vector<2x1024xf32> to vector<2x1024xbf16>
    %c0_6 = arith.constant 0 : index
    %c0_7 = arith.constant 0 : index
    %10 = vector.load %arg4[%c0_6, %c0_7] : memref<1024x64xbf16, #tpu.memory_space<vmem>>, vector<1024x64xbf16>
    %cst_8 = arith.constant dense<0.000000e+00> : vector<2x64xf32>
    %11 = tpu.matmul %9, %10, %cst_8 {dimension_numbers = #tpu.dot_dimension_numbers<[1], [0], [0], [1], [0, 0, 1, 1], [], []>} : vector<2x1024xbf16>, vector<1024x64xbf16>, vector<2x64xf32> -> vector<2x64xf32>
    %c0_9 = arith.constant 0 : index
    %c0_10 = arith.constant 0 : index
    %12 = vector.load %arg5[%c0_9, %c0_10] : memref<1x64xf32, #tpu.memory_space<vmem>>, vector<1x64xf32>
    %13 = vector.broadcast %12 : vector<1x64xf32> to vector<2x64xf32>
    %14 = arith.addf %11, %13 : vector<2x64xf32>
    %c0_11 = arith.constant 0 : index
    %c0_12 = arith.constant 0 : index
    %15 = vector.load %arg6[%c0_11, %c0_12] : memref<2x64xf32, #tpu.memory_space<vmem>>, vector<2x64xf32>
    tpu.vector_store %arg6[%c0_11, %c0_12], %14 {strides = array<i32>} : memref<2x64xf32, #tpu.memory_space<vmem>>, vector<2x64xf32>,
    return
  }
  func.func @transform_0(%arg0: i32) -> (i32, i32) {
    %c0_i32 = arith.constant 0 : i32
    %c0_i32_0 = arith.constant 0 : i32
    return %arg0, %c0_i32 : i32, i32
  }
  func.func @transform_1(%arg0: i32) -> (i32, i32) {
    %c0_i32 = arith.constant 0 : i32
    %c0_i32_0 = arith.constant 0 : i32
    %c0_i32_1 = arith.constant 0 : i32
    return %c0_i32, %c0_i32_0 : i32, i32
  }
  func.func @transform_2(%arg0: i32) -> (i32, i32) {
    %c0_i32 = arith.constant 0 : i32
    %c0_i32_0 = arith.constant 0 : i32
    %c0_i32_1 = arith.constant 0 : i32
    return %c0_i32, %c0_i32_0 : i32, i32
  }
  func.func @transform_3(%arg0: i32) -> (i32, i32) {
    %c0_i32 = arith.constant 0 : i32
    %c0_i32_0 = arith.constant 0 : i32
    %c0_i32_1 = arith.constant 0 : i32
    return %c0_i32, %c0_i32_0 : i32, i32
  }
  func.func @transform_4(%arg0: i32) -> (i32, i32) {
    %c0_i32 = arith.constant 0 : i32
    %c0_i32_0 = arith.constant 0 : i32
    %c0_i32_1 = arith.constant 0 : i32
    return %c0_i32, %c0_i32_0 : i32, i32
  }
  func.func @transform_5(%arg0: i32) -> (i32, i32) {
    %c0_i32 = arith.constant 0 : i32
    %c0_i32_0 = arith.constant 0 : i32
    return %arg0, %c0_i32 : i32, i32
  }
}

</mosaic_0001>

<bundles_post_ra>
// kernel: tpu_custom_call.1
= control target key start
LH: loop header
LB: loop body
LE: loop exit
PB: predicated region body
PF: predicated region fallthrough
CT: control target
= control target key end

     0   :  { %10 = vsyncpa [#allocation3], 0  ;;  %s5088_s0 = inlined_call_operand.hbm [shape: f32[2,784], index: 0, kind: input, shape index: {}]   ;;  %s5089_s1 = inlined_call_operand.hbm [shape: bf16[784,1024], index: 1, kind: input, shape index: {}]   ;;  %s5090_s2 = inlined_call_operand.hbm [shape: f32[1,1024], index: 2, kind: input, shape index: {}]   ;;  %s5091_s3 = inlined_call_operand.vmem [shape: bf16[1024,64], index: 3, kind: input, shape index: {}]   ;;  %s5092_s4 = inlined_call_operand.hbm [shape: f32[1,64], index: 4, kind: input, shape index: {}]   ;;  %s5093_s5 = inlined_call_operand.hbm [shape: f32[2,64], index: 5, kind: output, shape index: {}]  }
   0x1   :  { %11 = vsyncpa [#allocation6], 0 }
   0x2   :  { %12 = vsyncpa [#allocation9], 0 }
   0x3   :  { %13 = vsyncpa [#allocation4], 0  ;;  %s4688_s18 = smov [#allocation5]   ;;  %s4570_s22 = scalar_lea.hbm %s5089_s1, 50176 }
   0x4   :  { %s29_s19 = sshll.u32 %s4688_s18, 4  ;;  %p4571_p0 = scmp.ne.s32.totalorder %s5089_s1, %s4570_s22  ;;  %s30_s19 = int_to_ptr.vmem [resolvable:$true] %s29_s19 }
   0x5   :  { %p4574_p1 = scmp.lt.u32.totalorder %s4570_s22, %s5089_s1 }
   0x7   :  { %p4576_p2 = pnand %p4574_p1, %p4571_p0 }
   0x9   :  { %4579 = shalt.err (!%p4576_p2)
}
   0xa   :  { %s4580_s27 = scalar_lea.vmem %s30_s19, 50176  ;;  %p4585_p4 = scmp.lt.s32.totalorder %s30_s19, %s30_s19 }
   0xb   :  { %p4581_p3 = scmp.ne.s32.totalorder %s30_s19, %s4580_s27  ;;  %p4586_p5 = scmp.lt.s32.totalorder %s4580_s27, %s4580_s27 }
   0xd   :  { %p4587_p6 = por %p4586_p5, %p4585_p4 }
   0xf   :  { %p4588_p7 = pnand %p4587_p6, %p4581_p3 }
  0x11   :  { %4591 = shalt.err (!%p4588_p7)
}
  0x12   :  { %s4689_s28 = smov 512   ;;  %s4690_s29 = smov 32  }
  0x13   :  { %35 = dma.hbm_to_vmem [thread:$0]  %s5089_s1, 50176, %s30_s19, [#allocation6], %s4689_s28, %s4689_s28, %s4690_s29  }
  0x14   :  { %s4691_s7 = smov [#allocation2]   ;;  %s4692_s9 = smov [#allocation7]  }
  0x15   :  { %s20_s8 = sshll.u32 %s4691_s7, 4  ;;  %s42_s10 = sshll.u32 %s4692_s9, 4  ;;  %s21_s8 = int_to_ptr.vmem [resolvable:$true] %s20_s8  ;;  %s43_s10 = int_to_ptr.vmem [resolvable:$true] %s42_s10 }
  0x16   :  { %s4592_s13 = scalar_lea.hbm %s5088_s0, 224 }
  0x17   :  { %p4593_p8 = scmp.ne.s32.totalorder %s5088_s0, %s4592_s13  ;;  %p4596_p9 = scmp.lt.u32.totalorder %s4592_s13, %s5088_s0 }
  0x19   :  { %p4598_p10 = pnand %p4596_p9, %p4593_p8 }
  0x1b   :  { %4601 = shalt.err (!%p4598_p10)
}
  0x1c   :  { %s4602_s1 = scalar_lea.vmem %s21_s8, 224  ;;  %p4607_p12 = scmp.lt.s32.totalorder %s21_s8, %s21_s8 }
  0x1d   :  { %p4603_p11 = scmp.ne.s32.totalorder %s21_s8, %s4602_s1  ;;  %p4608_p13 = scmp.lt.s32.totalorder %s4602_s1, %s4602_s1 }
  0x1f   :  { %p4609_p0 = por %p4608_p13, %p4607_p12 }
  0x21   :  { %p4610_p1 = pnand %p4609_p0, %p4603_p11 }
  0x23   :  { %4613 = shalt.err (!%p4610_p1)
}
  0x24   :  { %23 = dma.hbm_to_vmem [thread:$0]  %s5088_s0, 224, %s21_s8, [#allocation3]  }
  0x25   :  { %s4614_s22 = scalar_lea.hbm %s5090_s2, 128 }
  0x26   :  { %p4615_p2 = scmp.ne.s32.totalorder %s5090_s2, %s4614_s22  ;;  %p4618_p3 = scmp.lt.u32.totalorder %s4614_s22, %s5090_s2 }
  0x28   :  { %p4620_p4 = pnand %p4618_p3, %p4615_p2 }
  0x2a   :  { %4623 = shalt.err (!%p4620_p4)
}
  0x2b   :  { %s4624_s27 = scalar_lea.vmem %s43_s10, 128  ;;  %p4629_p6 = scmp.lt.s32.totalorder %s43_s10, %s43_s10 }
  0x2c   :  { %p4625_p5 = scmp.ne.s32.totalorder %s43_s10, %s4624_s27  ;;  %p4630_p7 = scmp.lt.s32.totalorder %s4624_s27, %s4624_s27 }
  0x2e   :  { %p4631_p8 = por %p4630_p7, %p4629_p6 }
  0x30   :  { %p4632_p9 = pnand %p4631_p8, %p4625_p5 }
  0x32   :  { %4635 = shalt.err (!%p4632_p9)
}
  0x33   :  { %45 = dma.hbm_to_vmem [thread:$0]  %s5090_s2, 128, %s43_s10, [#allocation6]  }
  0x34   :  { %s4693_s29 = smov [#allocation8]   ;;  %s4636_s8 = scalar_lea.hbm %s5092_s4, 16 }
  0x35   :  { %s54_s30 = sshll.u32 %s4693_s29, 4  ;;  %p4637_p10 = scmp.ne.s32.totalorder %s5092_s4, %s4636_s8  ;;  %s55_s30 = int_to_ptr.vmem [resolvable:$true] %s54_s30 }
  0x36   :  { %p4640_p11 = scmp.lt.u32.totalorder %s4636_s8, %s5092_s4 }
  0x38   :  { %p4642_p12 = pnand %p4640_p11, %p4637_p10 }
  0x3a   :  { %4645 = shalt.err (!%p4642_p12)
}
  0x3b   :  { %s4646_s14 = scalar_lea.vmem %s55_s30, 16  ;;  %s4650_s2 = scalar_lea.vmem %s55_s30, 32 }
  0x3c   :  { %p4647_p13 = scmp.ne.s32.totalorder %s55_s30, %s4646_s14  ;;  %p4651_p0 = scmp.lt.s32.totalorder %s55_s30, %s55_s30 }
  0x3d   :  { %p4652_p1 = scmp.lt.s32.totalorder %s4650_s2, %s4646_s14 }
  0x3f   :  { %p4653_p2 = por %p4652_p1, %p4651_p0 }
  0x41   :  { %p4654_p3 = pnand %p4653_p2, %p4647_p13 }
  0x43   :  { %4657 = shalt.err (!%p4654_p3)
}
  0x44   :  { %57 = dma.hbm_to_vmem [thread:$0]  %s5092_s4, 16, %s55_s30, [#allocation9]  }
  0x45   :  { %4680 = dma.done.wait [#allocation3], 224  }
  0x46   :  { %4681 = vsyncadd [#allocation3], 4294967072 }
  0x47   :  { %4682 = dma.done.wait [#allocation6], 50304  }
  0x48   :  { %4683 = vsyncadd [#allocation6], 4294916992 }
  0x49   :  { %4684 = dma.done.wait [#allocation9], 16  }
  0x4a   :  { %4685 = vsyncadd [#allocation9], 4294967280  ;;  %v122_v0 = vld [vmem:[#allocation5] sm:$0xff]  ;;  %v123_v2 = vld [vmem:[#allocation5 + $0x8] sm:$0xff]  ;;  %v4694_v32 = vmov 1983009808   ;;  %v79_v34 = vlaneseq }
  0x4b   :  { %v126_v1 = vld [vmem:[#allocation5 + $0x20] sm:$0xff]  ;;  %v127_v4 = vld [vmem:[#allocation5 + $0x28] sm:$0xff]  ;;  %v77_v33 = vunpack.c.l.s4 %v4694_v32  ;;  %v4780_v59 = vld [vmem:[#allocation2] sm:$0xff]  ;;  %vm2516_vm0 = vcmask 130048   ;;  %vm3871_vm1 = vcmask 517120  }
  0x4c   :  { %v3891_v3 = vcombine.high %v122_v0, %v126_v1  ;;  %v3890_v5 = vcombine.low %v122_v0, %v126_v1  ;;  %v130_v6 = vld [vmem:[#allocation5 + $0x40] sm:$0xff]  ;;  %v3893_v8 = vcombine.high %v123_v2, %v127_v4  ;;  %v3892_v9 = vcombine.low %v123_v2, %v127_v4  ;;  %v131_v11 = vld [vmem:[#allocation5 + $0x48] sm:$0xff] }
  0x4d   :  { %v134_v7 = vld [vmem:[#allocation5 + $0x60] sm:$0xff]  ;;  %v135_v12 = vld [vmem:[#allocation5 + $0x68] sm:$0xff]  ;;  %v78_v43 = vunpack.c.0.s8 %v77_v33  ;;  %v4775_v44 = vshrl.u32 %v79_v34, 7 }
  0x4e   :  { %v3899_v10 = vcombine.high %v130_v6, %v134_v7  ;;  %v138_v13 = vld [vmem:[#allocation5 + $0x80] sm:$0xff]  ;;  %2520 = vmatprep.subr.bf16.mxu0 %v3891_v3  ;;  %v3901_v14 = vcombine.high %v131_v11, %v135_v12  ;;  %v139_v16 = vld [vmem:[#allocation5 + $0x88] sm:$0xff]  ;;  %2684 = vmatprep.subr.bf16.mxu1 %v3893_v8  ;;  %v3898_v18 = vcombine.low %v130_v6, %v134_v7 }
  0x4f   :  { %v142_v15 = vld [vmem:[#allocation5 + $0xa0] sm:$0xff]  ;;  %v143_v17 = vld [vmem:[#allocation5 + $0xa8] sm:$0xff]  ;;  %2521 = vmatpush1.bf16.msra.mxu0 %v3890_v5  ;;  %2685 = vmatpush1.bf16.msra.mxu1 %v3892_v9  ;;  %v3900_v19 = vcombine.low %v131_v11, %v135_v12  ;;  %v4778_v53 = vsub.s32 %v78_v43, %v4775_v44 }
  0x50   :  { %2522 = vmatprep.subr.bf16.mxu0 %v3899_v10  ;;  %v3907_v20 = vcombine.high %v138_v13, %v142_v15  ;;  %2686 = vmatprep.subr.bf16.mxu1 %v3901_v14  ;;  %v3909_v21 = vcombine.high %v139_v16, %v143_v17  ;;  %v146_v22 = vld [vmem:[#allocation5 + $0xc0] sm:$0xff]  ;;  %v147_v24 = vld [vmem:[#allocation5 + $0xc8] sm:$0xff]  ;;  %v3906_v26 = vcombine.low %v138_v13, %v142_v15 }
  0x51   :  { %v150_v23 = vld [vmem:[#allocation5 + $0xe0] sm:$0xff]  ;;  %v151_v25 = vld [vmem:[#allocation5 + $0xe8] sm:$0xff]  ;;  %v3908_v27 = vcombine.low %v139_v16, %v143_v17  ;;  %v4784_v63 = vrot.slane %v4780_v59, %v4778_v53 }
  0x52   :  { %v3915_v28 = vcombine.high %v146_v22, %v150_v23  ;;  %v3917_v29 = vcombine.high %v147_v24, %v151_v25  ;;  %v154_v30 = vld [vmem:[#allocation5 + $0x100] sm:$0xff]  ;;  %v155_v35 = vld [vmem:[#allocation5 + $0x108] sm:$0xff]  ;;  %v3914_v37 = vcombine.low %v146_v22, %v150_v23  ;;  %v3916_v38 = vcombine.low %v147_v24, %v151_v25 }
  0x53   :  { %2523 = vmatpush1.bf16.msra.mxu0 %v3898_v18  ;;  %2687 = vmatpush1.bf16.msra.mxu1 %v3900_v19  ;;  %v158_v31 = vld [vmem:[#allocation5 + $0x120] sm:$0xff]  ;;  %v159_v36 = vld [vmem:[#allocation5 + $0x128] sm:$0xff]  ;;  %v90_v3 = vcombine.high %v4784_v63, %v4784_v63 }
  0x54   :  { %2524 = vmatprep.subr.bf16.mxu0 %v3907_v20  ;;  %2688 = vmatprep.subr.bf16.mxu1 %v3909_v21  ;;  %v3923_v39 = vcombine.high %v154_v30, %v158_v31  ;;  %v3925_v40 = vcombine.high %v155_v35, %v159_v36  ;;  %v162_v41 = vld [vmem:[#allocation5 + $0x140] sm:$0xff]  ;;  %v163_v45 = vld [vmem:[#allocation5 + $0x148] sm:$0xff]  ;;  %v3922_v47 = vcombine.low %v154_v30, %v158_v31 }
  0x55   :  { %v166_v42 = vld [vmem:[#allocation5 + $0x160] sm:$0xff]  ;;  %v167_v46 = vld [vmem:[#allocation5 + $0x168] sm:$0xff]  ;;  %v3924_v48 = vcombine.low %v155_v35, %v159_v36  ;;  %v4788_v9 = vpack.c.bf16 %v90_v3, %v90_v3 }
  0x56   :  { %v3931_v49 = vcombine.high %v162_v41, %v166_v42  ;;  %v3933_v50 = vcombine.high %v163_v45, %v167_v46  ;;  %v170_v51 = vld [vmem:[#allocation5 + $0x180] sm:$0xff]  ;;  %v171_v54 = vld [vmem:[#allocation5 + $0x188] sm:$0xff]  ;;  %v3930_v56 = vcombine.low %v162_v41, %v166_v42  ;;  %v3932_v57 = vcombine.low %v163_v45, %v167_v46 }
  0x57   :  { %2525 = vmatpush1.bf16.msra.mxu0 %v3906_v26  ;;  %2689 = vmatpush1.bf16.msra.mxu1 %v3908_v27  ;;  %v174_v52 = vld [vmem:[#allocation5 + $0x1a0] sm:$0xff]  ;;  %v175_v55 = vld [vmem:[#allocation5 + $0x1a8] sm:$0xff] }
  0x58   :  { %2526 = vmatprep.subr.bf16.mxu0 %v3915_v28  ;;  %2690 = vmatprep.subr.bf16.mxu1 %v3917_v29  ;;  %v3939_v58 = vcombine.high %v170_v51, %v174_v52  ;;  %v3941_v60 = vcombine.high %v171_v54, %v175_v55  ;;  %v178_v61 = vld [vmem:[#allocation5 + $0x1c0] sm:$0xff]  ;;  %v179_v0 = vld [vmem:[#allocation5 + $0x1c8] sm:$0xff]  ;;  %v3938_v2 = vcombine.low %v170_v51, %v174_v52 }
  0x59   :  { %v182_v62 = vld [vmem:[#allocation5 + $0x1e0] sm:$0xff]  ;;  %v183_v1 = vld [vmem:[#allocation5 + $0x1e8] sm:$0xff]  ;;  %v3940_v4 = vcombine.low %v171_v54, %v175_v55  ;;  %2552 = vmatprep.mubr.bf16.mxu0 %v4788_v9  ;;  %2716 = vmatprep.mubr.bf16.mxu1 %v4788_v9 }
  0x5a   :  { %v3947_v5 = vcombine.high %v178_v61, %v182_v62  ;;  %v3949_v6 = vcombine.high %v179_v0, %v183_v1  ;;  %v186_v7 = vld [vmem:[#allocation5 + $0x200] sm:$0xff]  ;;  %v187_v10 = vld [vmem:[#allocation5 + $0x208] sm:$0xff]  ;;  %v3946_v12 = vcombine.low %v178_v61, %v182_v62  ;;  %v3948_v13 = vcombine.low %v179_v0, %v183_v1 }
  0x5b   :  { %2527 = vmatpush1.bf16.msra.mxu0 %v3914_v37  ;;  %2691 = vmatpush1.bf16.msra.mxu1 %v3916_v38  ;;  %v190_v8 = vld [vmem:[#allocation5 + $0x220] sm:$0xff]  ;;  %v191_v11 = vld [vmem:[#allocation5 + $0x228] sm:$0xff] }
  0x5c   :  { %2528 = vmatprep.subr.bf16.mxu0 %v3923_v39  ;;  %2692 = vmatprep.subr.bf16.mxu1 %v3925_v40  ;;  %v3955_v14 = vcombine.high %v186_v7, %v190_v8  ;;  %v3957_v15 = vcombine.high %v187_v10, %v191_v11  ;;  %v194_v16 = vld [vmem:[#allocation5 + $0x240] sm:$0xff]  ;;  %v195_v18 = vld [vmem:[#allocation5 + $0x248] sm:$0xff]  ;;  %v3954_v20 = vcombine.low %v186_v7, %v190_v8 }
  0x5d   :  { %v198_v17 = vld [vmem:[#allocation5 + $0x260] sm:$0xff]  ;;  %v199_v19 = vld [vmem:[#allocation5 + $0x268] sm:$0xff]  ;;  %v3956_v21 = vcombine.low %v187_v10, %v191_v11 }
  0x5e   :  { %v3963_v22 = vcombine.high %v194_v16, %v198_v17  ;;  %v3965_v23 = vcombine.high %v195_v18, %v199_v19  ;;  %v202_v24 = vld [vmem:[#allocation5 + $0x280] sm:$0xff]  ;;  %v203_v26 = vld [vmem:[#allocation5 + $0x288] sm:$0xff]  ;;  %v3962_v28 = vcombine.low %v194_v16, %v198_v17  ;;  %v3964_v29 = vcombine.low %v195_v18, %v199_v19 }
  0x5f   :  { %2529 = vmatpush1.bf16.msra.mxu0 %v3922_v47  ;;  %2693 = vmatpush1.bf16.msra.mxu1 %v3924_v48  ;;  %v206_v25 = vld [vmem:[#allocation5 + $0x2a0] sm:$0xff]  ;;  %v207_v27 = vld [vmem:[#allocation5 + $0x2a8] sm:$0xff] }
  0x60   :  { %2530 = vmatprep.subr.bf16.mxu0 %v3931_v49  ;;  %2694 = vmatprep.subr.bf16.mxu1 %v3933_v50  ;;  %v3971_v30 = vcombine.high %v202_v24, %v206_v25  ;;  %v3973_v31 = vcombine.high %v203_v26, %v207_v27  ;;  %v210_v32 = vld [vmem:[#allocation5 + $0x2c0] sm:$0xff]  ;;  %v211_v34 = vld [vmem:[#allocation5 + $0x2c8] sm:$0xff]  ;;  %v3970_v36 = vcombine.low %v202_v24, %v206_v25 }
  0x61   :  { %v214_v33 = vld [vmem:[#allocation5 + $0x2e0] sm:$0xff]  ;;  %v215_v35 = vld [vmem:[#allocation5 + $0x2e8] sm:$0xff]  ;;  %v3972_v37 = vcombine.low %v203_v26, %v207_v27  ;;  %v4801_v25 = vpack.c.bf16 %v4784_v63, %v4784_v63 }
  0x62   :  { %v3979_v38 = vcombine.high %v210_v32, %v214_v33  ;;  %v3981_v39 = vcombine.high %v211_v34, %v215_v35  ;;  %v218_v40 = vld [vmem:[#allocation5 + $0x300] sm:$0xff]  ;;  %v219_v42 = vld [vmem:[#allocation5 + $0x308] sm:$0xff]  ;;  %v3978_v45 = vcombine.low %v210_v32, %v214_v33  ;;  %v3980_v46 = vcombine.low %v211_v34, %v215_v35 }
  0x63   :  { %2531 = vmatpush1.bf16.msra.mxu0 %v3930_v56  ;;  %2695 = vmatpush1.bf16.msra.mxu1 %v3932_v57  ;;  %v222_v41 = vld [vmem:[#allocation5 + $0x320] sm:$0xff]  ;;  %v223_v43 = vld [vmem:[#allocation5 + $0x328] sm:$0xff] }
  0x64   :  { %2532 = vmatprep.subr.bf16.mxu0 %v3939_v58  ;;  %2696 = vmatprep.subr.bf16.mxu1 %v3941_v60  ;;  %v3987_v47 = vcombine.high %v218_v40, %v222_v41  ;;  %v3989_v48 = vcombine.high %v219_v42, %v223_v43  ;;  %v226_v49 = vld [vmem:[#allocation5 + $0x340] sm:$0xff]  ;;  %v227_v51 = vld [vmem:[#allocation5 + $0x348] sm:$0xff]  ;;  %v3986_v54 = vcombine.low %v218_v40, %v222_v41 }
  0x65   :  { %v230_v50 = vld [vmem:[#allocation5 + $0x360] sm:$0xff]  ;;  %v231_v52 = vld [vmem:[#allocation5 + $0x368] sm:$0xff]  ;;  %v3988_v55 = vcombine.low %v219_v42, %v223_v43 }
  0x66   :  { %v3995_v56 = vcombine.high %v226_v49, %v230_v50  ;;  %v3997_v57 = vcombine.high %v227_v51, %v231_v52  ;;  %v234_v58 = vld [vmem:[#allocation5 + $0x380] sm:$0xff]  ;;  %v235_v61 = vld [vmem:[#allocation5 + $0x388] sm:$0xff]  ;;  %v3994_v0 = vcombine.low %v226_v49, %v230_v50  ;;  %v3996_v1 = vcombine.low %v227_v51, %v231_v52 }
  0x67   :  { %2533 = vmatpush1.bf16.msra.mxu0 %v3938_v2  ;;  %2697 = vmatpush1.bf16.msra.mxu1 %v3940_v4  ;;  %v238_v60 = vld [vmem:[#allocation5 + $0x3a0] sm:$0xff]  ;;  %v239_v62 = vld [vmem:[#allocation5 + $0x3a8] sm:$0xff] }
  0x68   :  { %2534 = vmatprep.subr.bf16.mxu0 %v3947_v5  ;;  %2698 = vmatprep.subr.bf16.mxu1 %v3949_v6  ;;  %v4003_v2 = vcombine.high %v234_v58, %v238_v60  ;;  %v4005_v3 = vcombine.high %v235_v61, %v239_v62  ;;  %v242_v4 = vld [vmem:[#allocation5 + $0x3c0] sm:$0xff]  ;;  %v75_v6 = vcombine.high %v4780_v59, %v4780_v59  ;;  %v243_v7 = vld [vmem:[#allocation5 + $0x3c8] sm:$0xff] }
  0x69   :  { %v246_v5 = vld [vmem:[#allocation5 + $0x3e0] sm:$0xff]  ;;  %v247_v8 = vld [vmem:[#allocation5 + $0x3e8] sm:$0xff]  ;;  %v4002_v10 = vcombine.low %v234_v58, %v238_v60  ;;  %v4004_v11 = vcombine.low %v235_v61, %v239_v62 }
  0x6a   :  { %v4795_v16 = vrot.slane %v75_v6, %v4778_v53  ;;  %v251_v17 = vld [vmem:[#allocation5 + $0x408] sm:$0xff]  ;;  %v4010_v19 = vcombine.low %v242_v4, %v246_v5  ;;  %v4012_v59 = vcombine.low %v243_v7, %v247_v8  ;;  %v274_v42 = vld [vmem:[#allocation5 + $0x4c0] sm:$0xff] }
  0x6b   :  { %2535 = vmatpush1.bf16.msra.mxu0 %v3946_v12  ;;  %2699 = vmatpush1.bf16.msra.mxu1 %v3948_v13  ;;  %v4011_v12 = vcombine.high %v242_v4, %v246_v5  ;;  %v4013_v13 = vcombine.high %v243_v7, %v247_v8  ;;  %v255_v18 = vld [vmem:[#allocation5 + $0x428] sm:$0xff]  ;;  %v278_v43 = vld [vmem:[#allocation5 + $0x4e0] sm:$0xff] }
  0x6c   :  { %2536 = vmatprep.subr.bf16.mxu0 %v3955_v14  ;;  %2700 = vmatprep.subr.bf16.mxu1 %v3957_v15  ;;  %v250_v14 = vld [vmem:[#allocation5 + $0x400] sm:$0xff]  ;;  %v91_v24 = vcombine.high %v4795_v16, %v4795_v16  ;;  %v259_v26 = vld [vmem:[#allocation5 + $0x448] sm:$0xff]  ;;  %v4020_v32 = vcombine.low %v251_v17, %v255_v18  ;;  %v4043_v52 = vcombine.high %v274_v42, %v278_v43 }
  0x6d   :  { %v254_v15 = vld [vmem:[#allocation5 + $0x420] sm:$0xff]  ;;  %v263_v27 = vld [vmem:[#allocation5 + $0x468] sm:$0xff] }
  0x6e   :  { %v4029_v34 = vcombine.high %v259_v26, %v263_v27  ;;  %v4805_v35 = vpack.c.bf16 %v91_v24, %v91_v24  ;;  %v267_v63 = vld [vmem:[#allocation5 + $0x488] sm:$0xff]  ;;  %v282_v49 = vld [vmem:[#allocation5 + $0x500] sm:$0xff] }
  0x6f   :  { %2537 = vmatpush1.bf16.msra.mxu0 %v3954_v20  ;;  %2701 = vmatpush1.bf16.msra.mxu1 %v3956_v21  ;;  %v4019_v20 = vcombine.high %v250_v14, %v254_v15  ;;  %v4021_v21 = vcombine.high %v251_v17, %v255_v18  ;;  %v286_v50 = vld [vmem:[#allocation5 + $0x520] sm:$0xff]  ;;  %v299_v8 = vld [vmem:[#allocation5 + $0x588] sm:$0xff] }
  0x70   :  { %2538 = vmatprep.subr.bf16.mxu0 %v3963_v22  ;;  %2702 = vmatprep.subr.bf16.mxu1 %v3965_v23  ;;  %v258_v22 = vld [vmem:[#allocation5 + $0x440] sm:$0xff]  ;;  %v4051_v62 = vcombine.high %v282_v49, %v286_v50  ;;  %v307_v18 = vld [vmem:[#allocation5 + $0x5c8] sm:$0xff] }
  0x71   :  { %v262_v23 = vld [vmem:[#allocation5 + $0x460] sm:$0xff] }
  0x72   :  { %v4027_v33 = vcombine.high %v258_v22, %v262_v23  ;;  %v290_v58 = vld [vmem:[#allocation5 + $0x540] sm:$0xff] }
  0x73   :  { %2539 = vmatpush1.bf16.msra.mxu0 %v3962_v28  ;;  %2703 = vmatpush1.bf16.msra.mxu1 %v3964_v29  ;;  %v4018_v28 = vcombine.low %v250_v14, %v254_v15  ;;  %v266_v29 = vld [vmem:[#allocation5 + $0x480] sm:$0xff] }
  0x74   :  { %2540 = vmatprep.subr.bf16.mxu0 %v3971_v30  ;;  %2704 = vmatprep.subr.bf16.mxu1 %v3973_v31  ;;  %v270_v30 = vld [vmem:[#allocation5 + $0x4a0] sm:$0xff]  ;;  %v4803_v31 = vld [vmem:[#allocation2 + $0x8] sm:$0x3f] }
  0x75   :  { %v4035_v40 = vcombine.high %v266_v29, %v270_v30  ;;  %v294_v60 = vld [vmem:[#allocation5 + $0x560] sm:$0xff] }
  0x76   :  { %v4059_v5 = vcombine.high %v290_v58, %v294_v60  ;;  %v298_v6 = vld [vmem:[#allocation5 + $0x580] sm:$0xff] }
  0x77   :  { %2541 = vmatpush1.bf16.msra.mxu0 %v3970_v36  ;;  %2705 = vmatpush1.bf16.msra.mxu1 %v3972_v37  ;;  %v271_v36 = vld [vmem:[#allocation5 + $0x4a8] sm:$0xff]  ;;  %v92_v37 = vcombine.high %v4803_v31, %v4803_v31  ;;  %v302_v7 = vld [vmem:[#allocation5 + $0x5a0] sm:$0xff] }
  0x78   :  { %2542 = vmatprep.subr.bf16.mxu0 %v3979_v38  ;;  %2706 = vmatprep.subr.bf16.mxu1 %v3981_v39  ;;  %v4026_v38 = vcombine.low %v258_v22, %v262_v23  ;;  %v4028_v39 = vcombine.low %v259_v26, %v263_v27  ;;  %v4037_v41 = vcombine.high %v267_v63, %v271_v36  ;;  %v306_v15 = vld [vmem:[#allocation5 + $0x5c0] sm:$0xff]  ;;  %v315_v26 = vld [vmem:[#allocation5 + $0x608] sm:$0xff] }
  0x79   :  { %v4036_v51 = vcombine.low %v267_v63, %v271_v36  ;;  %v4067_v14 = vcombine.high %v298_v6, %v302_v7  ;;  %v310_v17 = vld [vmem:[#allocation5 + $0x5e0] sm:$0xff]  ;;  %v323_v63 = vld [vmem:[#allocation5 + $0x648] sm:$0xff] }
  0x7a   :  { %v4075_v22 = vcombine.high %v306_v15, %v310_v17  ;;  %v314_v23 = vld [vmem:[#allocation5 + $0x600] sm:$0xff] }
  0x7b   :  { %2543 = vmatpush1.bf16.msra.mxu0 %v3978_v45  ;;  %2707 = vmatpush1.bf16.msra.mxu1 %v3980_v46  ;;  %v275_v45 = vld [vmem:[#allocation5 + $0x4c8] sm:$0xff]  ;;  %v318_v24 = vld [vmem:[#allocation5 + $0x620] sm:$0xff] }
  0x7c   :  { %2544 = vmatprep.subr.bf16.mxu0 %v3987_v47  ;;  %2708 = vmatprep.subr.bf16.mxu1 %v3989_v48  ;;  %v279_v46 = vld [vmem:[#allocation5 + $0x4e8] sm:$0xff]  ;;  %v4814_v47 = vrot.slane %v92_v37, %v4778_v53  ;;  %v4034_v48 = vcombine.low %v266_v29, %v270_v30  ;;  %v4074_v29 = vcombine.low %v306_v15, %v310_v17  ;;  %v362_v15 = vld [vmem:[#allocation5 + $0x780] sm:$0xff] }
  0x7d   :  { %v4044_v61 = vcombine.low %v275_v45, %v279_v46  ;;  %v327_v37 = vld [vmem:[#allocation5 + $0x668] sm:$0xff]  ;;  %v366_v17 = vld [vmem:[#allocation5 + $0x7a0] sm:$0xff] }
  0x7f   :  { %2545 = vmatpush1.bf16.msra.mxu0 %v3986_v54  ;;  %2709 = vmatpush1.bf16.msra.mxu1 %v3988_v55  ;;  %v283_v54 = vld [vmem:[#allocation5 + $0x508] sm:$0xff] }
  0x80   :  { %2546 = vmatprep.subr.bf16.mxu0 %v3995_v56  ;;  %2710 = vmatprep.subr.bf16.mxu1 %v3997_v57  ;;  %v287_v55 = vld [vmem:[#allocation5 + $0x528] sm:$0xff]  ;;  %v4045_v56 = vcombine.high %v275_v45, %v279_v46  ;;  %v4042_v57 = vcombine.low %v274_v42, %v278_v43  ;;  %v334_v42 = vld [vmem:[#allocation5 + $0x6a0] sm:$0xff]  ;;  %v4093_v45 = vcombine.high %v323_v63, %v327_v37 }
  0x81   :  { %v4052_v4 = vcombine.low %v283_v54, %v287_v55  ;;  %v331_v43 = vld [vmem:[#allocation5 + $0x688] sm:$0xff] }
  0x82   :  { %v335_v46 = vld [vmem:[#allocation5 + $0x6a8] sm:$0xff] }
  0x83   :  { %2547 = vmatpush1.bf16.msra.mxu0 %v3994_v0  ;;  %2711 = vmatpush1.bf16.msra.mxu1 %v3996_v1  ;;  %v291_v0 = vld [vmem:[#allocation5 + $0x548] sm:$0xff] }
  0x84   :  { %2548 = vmatprep.subr.bf16.mxu0 %v4003_v2  ;;  %2712 = vmatprep.subr.bf16.mxu1 %v4005_v3  ;;  %v295_v1 = vld [vmem:[#allocation5 + $0x568] sm:$0xff]  ;;  %v4053_v2 = vcombine.high %v283_v54, %v287_v55  ;;  %v4050_v3 = vcombine.low %v282_v49, %v286_v50  ;;  %v4092_v49 = vcombine.low %v323_v63, %v327_v37 }
  0x85   :  { %v339_v54 = vld [vmem:[#allocation5 + $0x6c8] sm:$0xff]  ;;  %v4101_v55 = vcombine.high %v331_v43, %v335_v46 }
  0x86   :  { %v379_v63 = vld [vmem:[#allocation5 + $0x808] sm:$0xff] }
  0x87   :  { %2549 = vmatpush1.bf16.msra.mxu0 %v4002_v10  ;;  %2713 = vmatpush1.bf16.msra.mxu1 %v4004_v11  ;;  %v4061_v10 = vcombine.high %v291_v0, %v295_v1  ;;  %v303_v11 = vld [vmem:[#allocation5 + $0x5a8] sm:$0xff] }
  0x88   :  { %2550 = vmatprep.subr.bf16.mxu0 %v4011_v12  ;;  %2714 = vmatprep.subr.bf16.mxu1 %v4013_v13  ;;  %v4058_v12 = vcombine.low %v290_v58, %v294_v60  ;;  %v4060_v13 = vcombine.low %v291_v0, %v295_v1  ;;  %v4100_v58 = vcombine.low %v331_v43, %v335_v46  ;;  %v347_v0 = vld [vmem:[#allocation5 + $0x708] sm:$0xff]  ;;  %v386_v43 = vld [vmem:[#allocation5 + $0x840] sm:$0xff] }
  0x89   :  { %v383_v37 = vld [vmem:[#allocation5 + $0x828] sm:$0xff] }
  0x8b   :  { %2551 = vmatpush1.bf16.msra.mxu0 %v4010_v19  ;;  %2715 = vmatpush1.bf16.msra.mxu1 %v4012_v59  ;;  %v4069_v19 = vcombine.high %v299_v8, %v303_v11  ;;  %v311_v59 = vld [vmem:[#allocation5 + $0x5e8] sm:$0xff] }
  0x8c   :  { %2561 = vmatprep.subr.bf16.mxu0 %v4019_v20  ;;  %2725 = vmatprep.subr.bf16.mxu1 %v4021_v21  ;;  %v4066_v20 = vcombine.low %v298_v6, %v302_v7  ;;  %v4068_v21 = vcombine.low %v299_v8, %v303_v11  ;;  %v4077_v27 = vcombine.high %v307_v18, %v311_v59  ;;  %v354_v6 = vld [vmem:[#allocation5 + $0x740] sm:$0xff]  ;;  %v355_v8 = vld [vmem:[#allocation5 + $0x748] sm:$0xff] }
  0x8d   :  { %v4076_v30 = vcombine.low %v307_v18, %v311_v59  ;;  %v358_v7 = vld [vmem:[#allocation5 + $0x760] sm:$0xff]  ;;  %v359_v11 = vld [vmem:[#allocation5 + $0x768] sm:$0xff] }
  0x8e   :  { %2553 = vmatmul.mubr.bf16.vlgmr.msra.gmra.mrb[0].mxu0 %v4801_v25  ;;  %2717 = vmatmul.mubr.bf16.vlgmr.msra.gmra.mrb[0].mxu1 %v4801_v25  ;;  %v363_v18 = vld [vmem:[#allocation5 + $0x788] sm:$0xff] }
  0x8f   :  { %2562 = vmatpush1.bf16.msra.mxu0 %v4018_v28  ;;  %2726 = vmatpush1.bf16.msra.mxu1 %v4020_v32  ;;  %v319_v28 = vld [vmem:[#allocation5 + $0x628] sm:$0xff]  ;;  %v4083_v32 = vcombine.high %v314_v23, %v318_v24 }
  0x90   :  { %2563 = vmatprep.subr.bf16.mxu0 %v4027_v33  ;;  %2727 = vmatprep.subr.bf16.mxu1 %v4029_v34  ;;  %v322_v33 = vld [vmem:[#allocation5 + $0x640] sm:$0xff]  ;;  %v4085_v36 = vcombine.high %v315_v26, %v319_v28  ;;  %v367_v59 = vld [vmem:[#allocation5 + $0x7a8] sm:$0xff] }
  0x91   :  { %2593 = vmatprep.mubr.bf16.mxu0 %v4805_v35  ;;  %2757 = vmatprep.mubr.bf16.mxu1 %v4805_v35  ;;  %v326_v34 = vld [vmem:[#allocation5 + $0x660] sm:$0xff] }
  0x93   :  { %2564 = vmatpush1.bf16.msra.mxu0 %v4026_v38  ;;  %2728 = vmatpush1.bf16.msra.mxu1 %v4028_v39  ;;  %v4082_v38 = vcombine.low %v314_v23, %v318_v24  ;;  %v4084_v39 = vcombine.low %v315_v26, %v319_v28  ;;  %v370_v23 = vld [vmem:[#allocation5 + $0x7c0] sm:$0xff]  ;;  %v371_v26 = vld [vmem:[#allocation5 + $0x7c8] sm:$0xff] }
  0x94   :  { %2565 = vmatprep.subr.bf16.mxu0 %v4035_v40  ;;  %2729 = vmatprep.subr.bf16.mxu1 %v4037_v41  ;;  %v4091_v40 = vcombine.high %v322_v33, %v326_v34  ;;  %v330_v41 = vld [vmem:[#allocation5 + $0x680] sm:$0xff]  ;;  %v375_v28 = vld [vmem:[#allocation5 + $0x7e8] sm:$0xff] }
  0x95   :  { %v4099_v50 = vcombine.high %v330_v41, %v334_v42  ;;  %v374_v24 = vld [vmem:[#allocation5 + $0x7e0] sm:$0xff] }
  0x97   :  { %2566 = vmatpush1.bf16.msra.mxu0 %v4034_v48  ;;  %2730 = vmatpush1.bf16.msra.mxu1 %v4036_v51  ;;  %v4090_v48 = vcombine.low %v322_v33, %v326_v34  ;;  %v338_v51 = vld [vmem:[#allocation5 + $0x6c0] sm:$0xff] }
  0x98   :  { %2567 = vmatprep.subr.bf16.mxu0 %v4043_v52  ;;  %2731 = vmatprep.subr.bf16.mxu1 %v4045_v56  ;;  %v342_v52 = vld [vmem:[#allocation5 + $0x6e0] sm:$0xff]  ;;  %v343_v56 = vld [vmem:[#allocation5 + $0x6e8] sm:$0xff] }
  0x99   :  { %v4107_v60 = vcombine.high %v338_v51, %v342_v52  ;;  %v4109_v1 = vcombine.high %v339_v54, %v343_v56  ;;  %v378_v33 = vld [vmem:[#allocation5 + $0x800] sm:$0xff] }
  0x9a   :  { %v382_v34 = vld [vmem:[#allocation5 + $0x820] sm:$0xff] }
  0x9b   :  { %2568 = vmatpush1.bf16.msra.mxu0 %v4042_v57  ;;  %2732 = vmatpush1.bf16.msra.mxu1 %v4044_v61  ;;  %v4098_v57 = vcombine.low %v330_v41, %v334_v42  ;;  %v346_v61 = vld [vmem:[#allocation5 + $0x700] sm:$0xff]  ;;  %v4147_v41 = vcombine.high %v378_v33, %v382_v34  ;;  %v4149_v42 = vcombine.high %v379_v63, %v383_v37 }
  0x9c   :  { %2569 = vmatprep.subr.bf16.mxu0 %v4051_v62  ;;  %2733 = vmatprep.subr.bf16.mxu1 %v4053_v2  ;;  %v350_v62 = vld [vmem:[#allocation5 + $0x720] sm:$0xff]  ;;  %v351_v2 = vld [vmem:[#allocation5 + $0x728] sm:$0xff] }
  0x9f   :  { %2570 = vmatpush1.bf16.msra.mxu0 %v4050_v3  ;;  %2734 = vmatpush1.bf16.msra.mxu1 %v4052_v4  ;;  %v4106_v3 = vcombine.low %v338_v51, %v342_v52  ;;  %v4108_v4 = vcombine.low %v339_v54, %v343_v56  ;;  %v394_v54 = vld [vmem:[#allocation5 + $0x880] sm:$0xff] }
  0xa0   :  { %2571 = vmatprep.subr.bf16.mxu0 %v4059_v5  ;;  %2735 = vmatprep.subr.bf16.mxu1 %v4061_v10  ;;  %v4115_v5 = vcombine.high %v346_v61, %v350_v62  ;;  %v4117_v10 = vcombine.high %v347_v0, %v351_v2 }
  0xa3   :  { %2572 = vmatpush1.bf16.msra.mxu0 %v4058_v12  ;;  %2736 = vmatpush1.bf16.msra.mxu1 %v4060_v13  ;;  %v4114_v12 = vcombine.low %v346_v61, %v350_v62  ;;  %v4116_v13 = vcombine.low %v347_v0, %v351_v2  ;;  %v402_v0 = vld [vmem:[#allocation5 + $0x8c0] sm:$0xff]  ;;  %v403_v2 = vld [vmem:[#allocation5 + $0x8c8] sm:$0xff] }
  0xa4   :  { %2573 = vmatprep.subr.bf16.mxu0 %v4067_v14  ;;  %2737 = vmatprep.subr.bf16.mxu1 %v4069_v19  ;;  %v4123_v14 = vcombine.high %v354_v6, %v358_v7  ;;  %v4125_v19 = vcombine.high %v355_v8, %v359_v11 }
  0xa7   :  { %2574 = vmatpush1.bf16.msra.mxu0 %v4066_v20  ;;  %2738 = vmatpush1.bf16.msra.mxu1 %v4068_v21  ;;  %v4122_v20 = vcombine.low %v354_v6, %v358_v7  ;;  %v4124_v21 = vcombine.low %v355_v8, %v359_v11  ;;  %v410_v8 = vld [vmem:[#allocation5 + $0x900] sm:$0xff]  ;;  %v411_v11 = vld [vmem:[#allocation5 + $0x908] sm:$0xff] }
  0xa8   :  { %2575 = vmatprep.subr.bf16.mxu0 %v4075_v22  ;;  %2739 = vmatprep.subr.bf16.mxu1 %v4077_v27  ;;  %v4131_v22 = vcombine.high %v362_v15, %v366_v17  ;;  %v4133_v27 = vcombine.high %v363_v18, %v367_v59 }
  0xab   :  { %2576 = vmatpush1.bf16.msra.mxu0 %v4074_v29  ;;  %2740 = vmatpush1.bf16.msra.mxu1 %v4076_v30  ;;  %v4130_v29 = vcombine.low %v362_v15, %v366_v17  ;;  %v4132_v30 = vcombine.low %v363_v18, %v367_v59  ;;  %v418_v18 = vld [vmem:[#allocation5 + $0x940] sm:$0xff]  ;;  %v419_v59 = vld [vmem:[#allocation5 + $0x948] sm:$0xff] }
  0xac   :  { %2577 = vmatprep.subr.bf16.mxu0 %v4083_v32  ;;  %2741 = vmatprep.subr.bf16.mxu1 %v4085_v36  ;;  %v4139_v32 = vcombine.high %v370_v23, %v374_v24  ;;  %v4141_v36 = vcombine.high %v371_v26, %v375_v28 }
  0xaf   :  { %2578 = vmatpush1.bf16.msra.mxu0 %v4082_v38  ;;  %2742 = vmatpush1.bf16.msra.mxu1 %v4084_v39  ;;  %v4818_v38 = vrot.slane %v4803_v31, %v4778_v53  ;;  %v4138_v39 = vcombine.low %v370_v23, %v374_v24  ;;  %v391_v53 = vld [vmem:[#allocation5 + $0x868] sm:$0xff]  ;;  %v4146_v31 = vcombine.low %v378_v33, %v382_v34 }
  0xb0   :  { %2579 = vmatprep.subr.bf16.mxu0 %v4091_v40  ;;  %2743 = vmatprep.subr.bf16.mxu1 %v4093_v45  ;;  %v4140_v40 = vcombine.low %v371_v26, %v375_v28  ;;  %v390_v45 = vld [vmem:[#allocation5 + $0x860] sm:$0xff]  ;;  %v427_v28 = vld [vmem:[#allocation5 + $0x988] sm:$0xff] }
  0xb1   :  { %v107_v46 = vcombine.high %v4818_v38, %v4818_v38  ;;  %v4155_v51 = vcombine.high %v386_v43, %v390_v45  ;;  %v426_v26 = vld [vmem:[#allocation5 + $0x980] sm:$0xff] }
  0xb3   :  { %2580 = vmatpush1.bf16.msra.mxu0 %v4090_v48  ;;  %2744 = vmatpush1.bf16.msra.mxu1 %v4092_v49  ;;  %v4824_v48 = vpack.c.bf16 %v4795_v16, %v4795_v16  ;;  %v387_v49 = vld [vmem:[#allocation5 + $0x848] sm:$0xff]  ;;  %v4826_v56 = vpack.c.bf16 %v107_v46, %v107_v46  ;;  %v4154_v16 = vcombine.low %v386_v43, %v390_v45  ;;  %v442_v45 = vld [vmem:[#allocation5 + $0xa00] sm:$0xff] }
  0xb4   :  { %2581 = vmatprep.subr.bf16.mxu0 %v4099_v50  ;;  %2745 = vmatprep.subr.bf16.mxu1 %v4101_v55  ;;  %v4148_v50 = vcombine.low %v379_v63, %v383_v37  ;;  %v4157_v52 = vcombine.high %v387_v49, %v391_v53  ;;  %v398_v55 = vld [vmem:[#allocation5 + $0x8a0] sm:$0xff]  ;;  %v435_v37 = vld [vmem:[#allocation5 + $0x9c8] sm:$0xff] }
  0xb5   :  { %v4163_v61 = vcombine.high %v394_v54, %v398_v55  ;;  %v434_v63 = vld [vmem:[#allocation5 + $0x9c0] sm:$0xff] }
  0xb6   :  { %v446_v46 = vld [vmem:[#allocation5 + $0xa20] sm:$0xff] }
  0xb7   :  { %2582 = vmatpush1.bf16.msra.mxu0 %v4098_v57  ;;  %2746 = vmatpush1.bf16.msra.mxu1 %v4100_v58  ;;  %v395_v57 = vld [vmem:[#allocation5 + $0x888] sm:$0xff] }
  0xb8   :  { %2583 = vmatprep.subr.bf16.mxu0 %v4107_v60  ;;  %2747 = vmatprep.subr.bf16.mxu1 %v4109_v1  ;;  %v399_v58 = vld [vmem:[#allocation5 + $0x8a8] sm:$0xff]  ;;  %v4156_v60 = vcombine.low %v387_v49, %v391_v53  ;;  %v406_v1 = vld [vmem:[#allocation5 + $0x8e0] sm:$0xff] }
  0xb9   :  { %v4165_v62 = vcombine.high %v395_v57, %v399_v58  ;;  %v4171_v6 = vcombine.high %v402_v0, %v406_v1  ;;  %v443_v49 = vld [vmem:[#allocation5 + $0xa08] sm:$0xff] }
  0xba   :  { %v447_v53 = vld [vmem:[#allocation5 + $0xa28] sm:$0xff] }
  0xbb   :  { %2584 = vmatpush1.bf16.msra.mxu0 %v4106_v3  ;;  %2748 = vmatpush1.bf16.msra.mxu1 %v4108_v4  ;;  %v407_v3 = vld [vmem:[#allocation5 + $0x8e8] sm:$0xff]  ;;  %v4162_v4 = vcombine.low %v394_v54, %v398_v55  ;;  %v450_v54 = vld [vmem:[#allocation5 + $0xa40] sm:$0xff] }
  0xbc   :  { %2585 = vmatprep.subr.bf16.mxu0 %v4115_v5  ;;  %2749 = vmatprep.subr.bf16.mxu1 %v4117_v10  ;;  %v4164_v5 = vcombine.low %v395_v57, %v399_v58  ;;  %v4173_v7 = vcombine.high %v403_v2, %v407_v3  ;;  %v414_v10 = vld [vmem:[#allocation5 + $0x920] sm:$0xff]  ;;  %v451_v57 = vld [vmem:[#allocation5 + $0xa48] sm:$0xff] }
  0xbd   :  { %v4179_v15 = vcombine.high %v410_v8, %v414_v10  ;;  %v454_v55 = vld [vmem:[#allocation5 + $0xa60] sm:$0xff]  ;;  %v455_v58 = vld [vmem:[#allocation5 + $0xa68] sm:$0xff] }
  0xbf   :  { %2586 = vmatpush1.bf16.msra.mxu0 %v4114_v12  ;;  %2750 = vmatpush1.bf16.msra.mxu1 %v4116_v13  ;;  %v415_v12 = vld [vmem:[#allocation5 + $0x928] sm:$0xff]  ;;  %v4170_v13 = vcombine.low %v402_v0, %v406_v1  ;;  %v458_v0 = vld [vmem:[#allocation5 + $0xa80] sm:$0xff] }
  0xc0   :  { %2587 = vmatprep.subr.bf16.mxu0 %v4123_v14  ;;  %2751 = vmatprep.subr.bf16.mxu1 %v4125_v19  ;;  %v4172_v14 = vcombine.low %v403_v2, %v407_v3  ;;  %v4181_v17 = vcombine.high %v411_v11, %v415_v12  ;;  %v422_v19 = vld [vmem:[#allocation5 + $0x960] sm:$0xff]  ;;  %v459_v2 = vld [vmem:[#allocation5 + $0xa88] sm:$0xff] }
  0xc1   :  { %v4187_v23 = vcombine.high %v418_v18, %v422_v19  ;;  %v462_v1 = vld [vmem:[#allocation5 + $0xaa0] sm:$0xff]  ;;  %v463_v3 = vld [vmem:[#allocation5 + $0xaa8] sm:$0xff] }
  0xc3   :  { %2588 = vmatpush1.bf16.msra.mxu0 %v4122_v20  ;;  %2752 = vmatpush1.bf16.msra.mxu1 %v4124_v21  ;;  %v423_v20 = vld [vmem:[#allocation5 + $0x968] sm:$0xff]  ;;  %v4178_v21 = vcombine.low %v410_v8, %v414_v10  ;;  %v466_v8 = vld [vmem:[#allocation5 + $0xac0] sm:$0xff] }
  0xc4   :  { %2589 = vmatprep.subr.bf16.mxu0 %v4131_v22  ;;  %2753 = vmatprep.subr.bf16.mxu1 %v4133_v27  ;;  %v4180_v22 = vcombine.low %v411_v11, %v415_v12  ;;  %v4189_v24 = vcombine.high %v419_v59, %v423_v20  ;;  %v430_v27 = vld [vmem:[#allocation5 + $0x9a0] sm:$0xff]  ;;  %v467_v11 = vld [vmem:[#allocation5 + $0xac8] sm:$0xff] }
  0xc5   :  { %v4195_v33 = vcombine.high %v426_v26, %v430_v27  ;;  %v470_v10 = vld [vmem:[#allocation5 + $0xae0] sm:$0xff]  ;;  %v471_v12 = vld [vmem:[#allocation5 + $0xae8] sm:$0xff] }
  0xc7   :  { %2590 = vmatpush1.bf16.msra.mxu0 %v4130_v29  ;;  %2754 = vmatpush1.bf16.msra.mxu1 %v4132_v30  ;;  %v431_v29 = vld [vmem:[#allocation5 + $0x9a8] sm:$0xff]  ;;  %v4186_v30 = vcombine.low %v418_v18, %v422_v19  ;;  %v474_v18 = vld [vmem:[#allocation5 + $0xb00] sm:$0xff] }
  0xc8   :  { %2591 = vmatprep.subr.bf16.mxu0 %v4139_v32  ;;  %2755 = vmatprep.subr.bf16.mxu1 %v4141_v36  ;;  %v4188_v32 = vcombine.low %v419_v59, %v423_v20  ;;  %v4197_v34 = vcombine.high %v427_v28, %v431_v29  ;;  %v438_v36 = vld [vmem:[#allocation5 + $0x9e0] sm:$0xff]  ;;  %v475_v59 = vld [vmem:[#allocation5 + $0xb08] sm:$0xff] }
  0xc9   :  { %v478_v19 = vld [vmem:[#allocation5 + $0xb20] sm:$0xff]  ;;  %v479_v20 = vld [vmem:[#allocation5 + $0xb28] sm:$0xff] }
  0xcb   :  { %2592 = vmatpush1.bf16.msra.mxu0 %v4138_v39  ;;  %2756 = vmatpush1.bf16.msra.mxu1 %v4140_v40  ;;  %v439_v39 = vld [vmem:[#allocation5 + $0x9e8] sm:$0xff]  ;;  %v4194_v40 = vcombine.low %v426_v26, %v430_v27  ;;  %v482_v26 = vld [vmem:[#allocation5 + $0xb40] sm:$0xff] }
  0xcc   :  { %2602 = vmatprep.subr.bf16.mxu0 %v4147_v41  ;;  %2766 = vmatprep.subr.bf16.mxu1 %v4149_v42  ;;  %v4196_v41 = vcombine.low %v427_v28, %v431_v29  ;;  %v4203_v42 = vcombine.high %v434_v63, %v438_v36  ;;  %v4205_v43 = vcombine.high %v435_v37, %v439_v39  ;;  %v486_v27 = vld [vmem:[#allocation5 + $0xb60] sm:$0xff]  ;;  %v483_v28 = vld [vmem:[#allocation5 + $0xb48] sm:$0xff] }
  0xcd   :  { %v487_v29 = vld [vmem:[#allocation5 + $0xb68] sm:$0xff] }
  0xce   :  { %2594 = vmatmul.mubr.bf16.vlgmr.msra.gmra.mrb[0].mxu0 %v4824_v48  ;;  %2758 = vmatmul.mubr.bf16.vlgmr.msra.gmra.mrb[0].mxu1 %v4824_v48 }
  0xcf   :  { %2603 = vmatpush1.bf16.msra.mxu0 %v4146_v31  ;;  %2767 = vmatpush1.bf16.msra.mxu1 %v4148_v50  ;;  %v4202_v31 = vcombine.low %v434_v63, %v438_v36  ;;  %v4204_v50 = vcombine.low %v435_v37, %v439_v39  ;;  %v490_v63 = vld [vmem:[#allocation5 + $0xb80] sm:$0xff]  ;;  %v491_v37 = vld [vmem:[#allocation5 + $0xb88] sm:$0xff] }
  0xd0   :  { %2604 = vmatprep.subr.bf16.mxu0 %v4155_v51  ;;  %2768 = vmatprep.subr.bf16.mxu1 %v4157_v52  ;;  %v4211_v51 = vcombine.high %v442_v45, %v446_v46  ;;  %v4213_v52 = vcombine.high %v443_v49, %v447_v53  ;;  %v494_v36 = vld [vmem:[#allocation5 + $0xba0] sm:$0xff]  ;;  %v495_v39 = vld [vmem:[#allocation5 + $0xba8] sm:$0xff] }
  0xd1   :  { %2634 = vmatprep.mubr.bf16.mxu0 %v4826_v56  ;;  %2798 = vmatprep.mubr.bf16.mxu1 %v4826_v56 }
  0xd3   :  { %2605 = vmatpush1.bf16.msra.mxu0 %v4154_v16  ;;  %2769 = vmatpush1.bf16.msra.mxu1 %v4156_v60  ;;  %v4210_v16 = vcombine.low %v442_v45, %v446_v46  ;;  %v4212_v60 = vcombine.low %v443_v49, %v447_v53  ;;  %v498_v45 = vld [vmem:[#allocation5 + $0xbc0] sm:$0xff]  ;;  %v499_v49 = vld [vmem:[#allocation5 + $0xbc8] sm:$0xff] }
  0xd4   :  { %2606 = vmatprep.subr.bf16.mxu0 %v4163_v61  ;;  %2770 = vmatprep.subr.bf16.mxu1 %v4165_v62  ;;  %v4219_v61 = vcombine.high %v450_v54, %v454_v55  ;;  %v4221_v62 = vcombine.high %v451_v57, %v455_v58  ;;  %v502_v46 = vld [vmem:[#allocation5 + $0xbe0] sm:$0xff]  ;;  %v503_v53 = vld [vmem:[#allocation5 + $0xbe8] sm:$0xff] }
  0xd7   :  { %2607 = vmatpush1.bf16.msra.mxu0 %v4162_v4  ;;  %2771 = vmatpush1.bf16.msra.mxu1 %v4164_v5  ;;  %v4218_v4 = vcombine.low %v450_v54, %v454_v55  ;;  %v4220_v5 = vcombine.low %v451_v57, %v455_v58  ;;  %v506_v54 = vld [vmem:[#allocation5 + $0xc00] sm:$0xff]  ;;  %v507_v57 = vld [vmem:[#allocation5 + $0xc08] sm:$0xff] }
  0xd8   :  { %2608 = vmatprep.subr.bf16.mxu0 %v4171_v6  ;;  %2772 = vmatprep.subr.bf16.mxu1 %v4173_v7  ;;  %v4227_v6 = vcombine.high %v458_v0, %v462_v1  ;;  %v4229_v7 = vcombine.high %v459_v2, %v463_v3  ;;  %v510_v55 = vld [vmem:[#allocation5 + $0xc20] sm:$0xff]  ;;  %v511_v58 = vld [vmem:[#allocation5 + $0xc28] sm:$0xff] }
  0xdb   :  { %2609 = vmatpush1.bf16.msra.mxu0 %v4170_v13  ;;  %2773 = vmatpush1.bf16.msra.mxu1 %v4172_v14  ;;  %v4226_v13 = vcombine.low %v458_v0, %v462_v1  ;;  %v4228_v14 = vcombine.low %v459_v2, %v463_v3  ;;  %v4834_v0 = vpack.c.bf16 %v4818_v38, %v4818_v38  ;;  %v124_v1 = vld [vmem:[#allocation5 + $0x10] sm:$0xff]  ;;  %v4695_v38 = vmov 0  }
  0xdc   :  { %2610 = vmatprep.subr.bf16.mxu0 %v4179_v15  ;;  %2774 = vmatprep.subr.bf16.mxu1 %v4181_v17  ;;  %v4235_v15 = vcombine.high %v466_v8, %v470_v10  ;;  %v4237_v17 = vcombine.high %v467_v11, %v471_v12  ;;  %v128_v2 = vld [vmem:[#allocation5 + $0x30] sm:$0xff]  ;;  %v4274_v3 = vcombine.low %v506_v54, %v510_v55 }
  0xdf   :  { %2611 = vmatpush1.bf16.msra.mxu0 %v4178_v21  ;;  %2775 = vmatpush1.bf16.msra.mxu1 %v4180_v22  ;;  %v4234_v21 = vcombine.low %v466_v8, %v470_v10  ;;  %v4236_v22 = vcombine.low %v467_v11, %v471_v12  ;;  %v132_v10 = vld [vmem:[#allocation5 + $0x50] sm:$0xff]  ;;  %v4842_v12 = vpack.c.bf16 %v4814_v47, %v4814_v47 }
  0xe0   :  { %2612 = vmatprep.subr.bf16.mxu0 %v4187_v23  ;;  %2776 = vmatprep.subr.bf16.mxu1 %v4189_v24  ;;  %v4243_v23 = vcombine.high %v474_v18, %v478_v19  ;;  %v4245_v24 = vcombine.high %v475_v59, %v479_v20  ;;  %v136_v11 = vld [vmem:[#allocation5 + $0x70] sm:$0xff] }
  0xe1   :  { %v3902_v47 = vcombine.low %v132_v10, %v136_v11 }
  0xe3   :  { %2613 = vmatpush1.bf16.msra.mxu0 %v4186_v30  ;;  %2777 = vmatpush1.bf16.msra.mxu1 %v4188_v32  ;;  %v4242_v30 = vcombine.low %v474_v18, %v478_v19  ;;  %v4244_v32 = vcombine.low %v475_v59, %v479_v20  ;;  %v3903_v18 = vcombine.high %v132_v10, %v136_v11  ;;  %v140_v59 = vld [vmem:[#allocation5 + $0x90] sm:$0xff] }
  0xe4   :  { %2614 = vmatprep.subr.bf16.mxu0 %v4195_v33  ;;  %2778 = vmatprep.subr.bf16.mxu1 %v4197_v34  ;;  %v4251_v33 = vcombine.high %v482_v26, %v486_v27  ;;  %v4253_v34 = vcombine.high %v483_v28, %v487_v29  ;;  %v144_v20 = vld [vmem:[#allocation5 + $0xb0] sm:$0xff] }
  0xe5   :  { %v188_v10 = vld [vmem:[#allocation5 + $0x210] sm:$0xff] }
  0xe6   :  { %v192_v11 = vld [vmem:[#allocation5 + $0x230] sm:$0xff] }
  0xe7   :  { %2615 = vmatpush1.bf16.msra.mxu0 %v4194_v40  ;;  %2779 = vmatpush1.bf16.msra.mxu1 %v4196_v41  ;;  %v4250_v40 = vcombine.low %v482_v26, %v486_v27  ;;  %v4252_v41 = vcombine.low %v483_v28, %v487_v29  ;;  %v148_v27 = vld [vmem:[#allocation5 + $0xd0] sm:$0xff]  ;;  %v149_v29 = vld [vmem:[#allocation5 + $0xd8] sm:$0xff] }
  0xe8   :  { %2616 = vmatprep.subr.bf16.mxu0 %v4203_v42  ;;  %2780 = vmatprep.subr.bf16.mxu1 %v4205_v43  ;;  %v4259_v42 = vcombine.high %v490_v63, %v494_v36  ;;  %v4261_v43 = vcombine.high %v491_v37, %v495_v39  ;;  %v152_v28 = vld [vmem:[#allocation5 + $0xf0] sm:$0xff] }
  0xeb   :  { %2617 = vmatpush1.bf16.msra.mxu0 %v4202_v31  ;;  %2781 = vmatpush1.bf16.msra.mxu1 %v4204_v50  ;;  %v4258_v31 = vcombine.low %v490_v63, %v494_v36  ;;  %v4260_v50 = vcombine.low %v491_v37, %v495_v39  ;;  %v156_v36 = vld [vmem:[#allocation5 + $0x110] sm:$0xff]  ;;  %v157_v39 = vld [vmem:[#allocation5 + $0x118] sm:$0xff] }
  0xec   :  { %2618 = vmatprep.subr.bf16.mxu0 %v4211_v51  ;;  %2782 = vmatprep.subr.bf16.mxu1 %v4213_v52  ;;  %v4267_v51 = vcombine.high %v498_v45, %v502_v46  ;;  %v4269_v52 = vcombine.high %v499_v49, %v503_v53  ;;  %v160_v37 = vld [vmem:[#allocation5 + $0x130] sm:$0xff] }
  0xef   :  { %2619 = vmatpush1.bf16.msra.mxu0 %v4210_v16  ;;  %2783 = vmatpush1.bf16.msra.mxu1 %v4212_v60  ;;  %v4266_v16 = vcombine.low %v498_v45, %v502_v46  ;;  %v4268_v60 = vcombine.low %v499_v49, %v503_v53  ;;  %v164_v45 = vld [vmem:[#allocation5 + $0x150] sm:$0xff]  ;;  %v165_v49 = vld [vmem:[#allocation5 + $0x158] sm:$0xff] }
  0xf0   :  { %2620 = vmatprep.subr.bf16.mxu0 %v4219_v61  ;;  %2784 = vmatprep.subr.bf16.mxu1 %v4221_v62  ;;  %v4275_v61 = vcombine.high %v506_v54, %v510_v55  ;;  %v4277_v62 = vcombine.high %v507_v57, %v511_v58  ;;  %v168_v46 = vld [vmem:[#allocation5 + $0x170] sm:$0xff]  ;;  %v169_v53 = vld [vmem:[#allocation5 + $0x178] sm:$0xff] }
  0xf1   :  { %v172_v54 = vld [vmem:[#allocation5 + $0x190] sm:$0xff] }
  0xf2   :  { %v176_v55 = vld [vmem:[#allocation5 + $0x1b0] sm:$0xff] }
  0xf3   :  { %2621 = vmatpush1.bf16.msra.mxu0 %v4218_v4  ;;  %2785 = vmatpush1.bf16.msra.mxu1 %v4220_v5  ;;  %v125_v4 = vld [vmem:[#allocation5 + $0x18] sm:$0xff] }
  0xf4   :  { %2622 = vmatprep.subr.bf16.mxu0 %v4227_v6  ;;  %2786 = vmatprep.subr.bf16.mxu1 %v4229_v7  ;;  %v129_v5 = vld [vmem:[#allocation5 + $0x38] sm:$0xff]  ;;  %v4276_v6 = vcombine.low %v507_v57, %v511_v58  ;;  %v3895_v7 = vcombine.high %v124_v1, %v128_v2 }
  0xf5   :  { %v3897_v8 = vcombine.high %v125_v4, %v129_v5  ;;  %v173_v57 = vld [vmem:[#allocation5 + $0x198] sm:$0xff] }
  0xf6   :  { %v177_v58 = vld [vmem:[#allocation5 + $0x1b8] sm:$0xff] }
  0xf7   :  { %2623 = vmatpush1.bf16.msra.mxu0 %v4226_v13  ;;  %2787 = vmatpush1.bf16.msra.mxu1 %v4228_v14  ;;  %v133_v13 = vld [vmem:[#allocation5 + $0x58] sm:$0xff] }
  0xf8   :  { %2624 = vmatprep.subr.bf16.mxu0 %v4235_v15  ;;  %2788 = vmatprep.subr.bf16.mxu1 %v4237_v17  ;;  %v137_v14 = vld [vmem:[#allocation5 + $0x78] sm:$0xff]  ;;  %v3894_v15 = vcombine.low %v124_v1, %v128_v2  ;;  %v3896_v17 = vcombine.low %v125_v4, %v129_v5  ;;  %v180_v1 = vld [vmem:[#allocation5 + $0x1d0] sm:$0xff]  ;;  %v3942_v5 = vcombine.low %v172_v54, %v176_v55 }
  0xf9   :  { %v3905_v19 = vcombine.high %v133_v13, %v137_v14  ;;  %v184_v2 = vld [vmem:[#allocation5 + $0x1f0] sm:$0xff]  ;;  %v185_v4 = vld [vmem:[#allocation5 + $0x1f8] sm:$0xff] }
  0xfb   :  { %2625 = vmatpush1.bf16.msra.mxu0 %v4234_v21  ;;  %2789 = vmatpush1.bf16.msra.mxu1 %v4236_v22  ;;  %v141_v21 = vld [vmem:[#allocation5 + $0x98] sm:$0xff] }
  0xfc   :  { %2626 = vmatprep.subr.bf16.mxu0 %v4243_v23  ;;  %2790 = vmatprep.subr.bf16.mxu1 %v4245_v24  ;;  %v145_v22 = vld [vmem:[#allocation5 + $0xb8] sm:$0xff]  ;;  %v3904_v23 = vcombine.low %v133_v13, %v137_v14  ;;  %v3911_v24 = vcombine.high %v140_v59, %v144_v20 }
  0xfd   :  { %v3913_v26 = vcombine.high %v141_v21, %v145_v22  ;;  %v189_v13 = vld [vmem:[#allocation5 + $0x218] sm:$0xff] }
  0xfe   :  { %v193_v14 = vld [vmem:[#allocation5 + $0x238] sm:$0xff] }
  0xff   :  { %2627 = vmatpush1.bf16.msra.mxu0 %v4242_v30  ;;  %2791 = vmatpush1.bf16.msra.mxu1 %v4244_v32  ;;  %v153_v30 = vld [vmem:[#allocation5 + $0xf8] sm:$0xff]  ;;  %v3910_v32 = vcombine.low %v140_v59, %v144_v20  ;;  %v196_v59 = vld [vmem:[#allocation5 + $0x250] sm:$0xff] }
 0x100   :  { %2628 = vmatprep.subr.bf16.mxu0 %v4251_v33  ;;  %2792 = vmatprep.subr.bf16.mxu1 %v4253_v34  ;;  %v3912_v33 = vcombine.low %v141_v21, %v145_v22  ;;  %v3919_v34 = vcombine.high %v148_v27, %v152_v28  ;;  %v3921_v63 = vcombine.high %v149_v29, %v153_v30  ;;  %v200_v20 = vld [vmem:[#allocation5 + $0x270] sm:$0xff]  ;;  %v197_v21 = vld [vmem:[#allocation5 + $0x258] sm:$0xff] }
 0x101   :  { %v201_v22 = vld [vmem:[#allocation5 + $0x278] sm:$0xff] }
 0x103   :  { %2629 = vmatpush1.bf16.msra.mxu0 %v4250_v40  ;;  %2793 = vmatpush1.bf16.msra.mxu1 %v4252_v41  ;;  %v161_v40 = vld [vmem:[#allocation5 + $0x138] sm:$0xff]  ;;  %v3918_v41 = vcombine.low %v148_v27, %v152_v28  ;;  %v204_v27 = vld [vmem:[#allocation5 + $0x290] sm:$0xff] }
 0x104   :  { %2630 = vmatprep.subr.bf16.mxu0 %v4259_v42  ;;  %2794 = vmatprep.subr.bf16.mxu1 %v4261_v43  ;;  %v3920_v42 = vcombine.low %v149_v29, %v153_v30  ;;  %v3927_v43 = vcombine.high %v156_v36, %v160_v37  ;;  %v208_v28 = vld [vmem:[#allocation5 + $0x2b0] sm:$0xff]  ;;  %v205_v29 = vld [vmem:[#allocation5 + $0x298] sm:$0xff] }
 0x105   :  { %v209_v30 = vld [vmem:[#allocation5 + $0x2b8] sm:$0xff] }
 0x107   :  { %2631 = vmatpush1.bf16.msra.mxu0 %v4258_v31  ;;  %2795 = vmatpush1.bf16.msra.mxu1 %v4260_v50  ;;  %v3926_v31 = vcombine.low %v156_v36, %v160_v37  ;;  %v3928_v50 = vcombine.low %v157_v39, %v161_v40  ;;  %v212_v36 = vld [vmem:[#allocation5 + $0x2d0] sm:$0xff] }
 0x108   :  { %2632 = vmatprep.subr.bf16.mxu0 %v4267_v51  ;;  %2796 = vmatprep.subr.bf16.mxu1 %v4269_v52  ;;  %v3935_v51 = vcombine.high %v164_v45, %v168_v46  ;;  %v3937_v52 = vcombine.high %v165_v49, %v169_v53  ;;  %v216_v37 = vld [vmem:[#allocation5 + $0x2f0] sm:$0xff] }
 0x10b   :  { %2633 = vmatpush1.bf16.msra.mxu0 %v4266_v16  ;;  %2797 = vmatpush1.bf16.msra.mxu1 %v4268_v60  ;;  %v3934_v16 = vcombine.low %v164_v45, %v168_v46  ;;  %v3936_v60 = vcombine.low %v165_v49, %v169_v53  ;;  %v220_v45 = vld [vmem:[#allocation5 + $0x310] sm:$0xff]  ;;  %v221_v49 = vld [vmem:[#allocation5 + $0x318] sm:$0xff] }
 0x10c   :  { %2643 = vmatprep.subr.bf16.mxu0 %v4275_v61  ;;  %2807 = vmatprep.subr.bf16.mxu1 %v4277_v62  ;;  %v3943_v61 = vcombine.high %v172_v54, %v176_v55  ;;  %v3945_v62 = vcombine.high %v173_v57, %v177_v58  ;;  %v224_v46 = vld [vmem:[#allocation5 + $0x330] sm:$0xff]  ;;  %v225_v53 = vld [vmem:[#allocation5 + $0x338] sm:$0xff] }
 0x10d   :  { %v228_v54 = vld [vmem:[#allocation5 + $0x350] sm:$0xff] }
 0x10e   :  { %2635 = vmatmul.mubr.bf16.vlgmr.msra.gmra.mrb[0].mxu0 %v4834_v0  ;;  %2799 = vmatmul.mubr.bf16.vlgmr.msra.gmra.mrb[0].mxu1 %v4834_v0  ;;  %v232_v55 = vld [vmem:[#allocation5 + $0x370] sm:$0xff] }
 0x10f   :  { %2644 = vmatpush1.bf16.msra.mxu0 %v4274_v3  ;;  %2808 = vmatpush1.bf16.msra.mxu1 %v4276_v6  ;;  %v181_v3 = vld [vmem:[#allocation5 + $0x1d8] sm:$0xff]  ;;  %v3944_v6 = vcombine.low %v173_v57, %v177_v58 }
 0x110   :  { %2675 = vmatprep.mubr.bf16.mxu0 %v4695_v38  ;;  %2839 = vmatprep.mubr.bf16.mxu1 %v4695_v38  ;;  %v229_v57 = vld [vmem:[#allocation5 + $0x358] sm:$0xff] }
 0x111   :  { %2848 = vmatprep.subr.bf16.mxu0 %v3895_v7  ;;  %3012 = vmatprep.subr.bf16.mxu1 %v3897_v8  ;;  %v3951_v7 = vcombine.high %v180_v1, %v184_v2  ;;  %v3953_v8 = vcombine.high %v181_v3, %v185_v4  ;;  %v233_v58 = vld [vmem:[#allocation5 + $0x378] sm:$0xff] }
 0x11a   :  { %4282 = vmatmul.mubr.msk.bf16.vlgmr.msra.gmra.mrb[0].mxu0 %vm2516_vm0, %v4842_v12  ;;  %4283 = vmatmul.mubr.msk.bf16.vlgmr.msra.gmra.mrb[0].mxu1 %vm2516_vm0, %v4842_v12 }
 0x11b   :  { %2849 = vmatpush1.bf16.msra.mxu0 %v3894_v15  ;;  %3013 = vmatpush1.bf16.msra.mxu1 %v3896_v17  ;;  %v3950_v15 = vcombine.low %v180_v1, %v184_v2  ;;  %v3952_v17 = vcombine.low %v181_v3, %v185_v4  ;;  %v236_v1 = vld [vmem:[#allocation5 + $0x390] sm:$0xff]  ;;  %v237_v3 = vld [vmem:[#allocation5 + $0x398] sm:$0xff] }
 0x11c   :  { %2850 = vmatprep.subr.bf16.mxu0 %v3903_v18  ;;  %3014 = vmatprep.subr.bf16.mxu1 %v3905_v19  ;;  %v3959_v18 = vcombine.high %v188_v10, %v192_v11  ;;  %v3961_v19 = vcombine.high %v189_v13, %v193_v14  ;;  %v240_v2 = vld [vmem:[#allocation5 + $0x3b0] sm:$0xff]  ;;  %v241_v4 = vld [vmem:[#allocation5 + $0x3b8] sm:$0xff] }
 0x11d   :  { %2880 = vmatprep.mubr.bf16.mxu0 %v4788_v9  ;;  %3044 = vmatprep.mubr.bf16.mxu1 %v4788_v9  ;;  %v3929_v9 = vcombine.high %v157_v39, %v161_v40  ;;  %v213_v39 = vld [vmem:[#allocation5 + $0x2d8] sm:$0xff] }
 0x11e   :  { %v217_v40 = vld [vmem:[#allocation5 + $0x2f8] sm:$0xff] }
 0x11f   :  { %2851 = vmatpush1.bf16.msra.mxu0 %v3902_v47  ;;  %3015 = vmatpush1.bf16.msra.mxu1 %v3904_v23  ;;  %v3958_v47 = vcombine.low %v188_v10, %v192_v11  ;;  %v3960_v23 = vcombine.low %v189_v13, %v193_v14  ;;  %v244_v10 = vld [vmem:[#allocation5 + $0x3d0] sm:$0xff]  ;;  %v245_v13 = vld [vmem:[#allocation5 + $0x3d8] sm:$0xff] }
 0x120   :  { %2852 = vmatprep.subr.bf16.mxu0 %v3911_v24  ;;  %3016 = vmatprep.subr.bf16.mxu1 %v3913_v26  ;;  %v3967_v24 = vcombine.high %v196_v59, %v200_v20  ;;  %v3969_v26 = vcombine.high %v197_v21, %v201_v22  ;;  %v248_v11 = vld [vmem:[#allocation5 + $0x3f0] sm:$0xff]  ;;  %v249_v14 = vld [vmem:[#allocation5 + $0x3f8] sm:$0xff] }
 0x123   :  { %2853 = vmatpush1.bf16.msra.mxu0 %v3910_v32  ;;  %3017 = vmatpush1.bf16.msra.mxu1 %v3912_v33  ;;  %v3966_v32 = vcombine.low %v196_v59, %v200_v20  ;;  %v3968_v33 = vcombine.low %v197_v21, %v201_v22  ;;  %v252_v59 = vld [vmem:[#allocation5 + $0x410] sm:$0xff]  ;;  %v253_v21 = vld [vmem:[#allocation5 + $0x418] sm:$0xff] }
 0x124   :  { %2854 = vmatprep.subr.bf16.mxu0 %v3919_v34  ;;  %3018 = vmatprep.subr.bf16.mxu1 %v3921_v63  ;;  %v3975_v34 = vcombine.high %v204_v27, %v208_v28  ;;  %v3977_v63 = vcombine.high %v205_v29, %v209_v30  ;;  %v256_v20 = vld [vmem:[#allocation5 + $0x430] sm:$0xff]  ;;  %v257_v22 = vld [vmem:[#allocation5 + $0x438] sm:$0xff] }
 0x127   :  { %2855 = vmatpush1.bf16.msra.mxu0 %v3918_v41  ;;  %3019 = vmatpush1.bf16.msra.mxu1 %v3920_v42  ;;  %v3974_v41 = vcombine.low %v204_v27, %v208_v28  ;;  %v3976_v42 = vcombine.low %v205_v29, %v209_v30  ;;  %v260_v27 = vld [vmem:[#allocation5 + $0x450] sm:$0xff]  ;;  %v261_v29 = vld [vmem:[#allocation5 + $0x458] sm:$0xff] }
 0x128   :  { %2856 = vmatprep.subr.bf16.mxu0 %v3927_v43  ;;  %3020 = vmatprep.subr.bf16.mxu1 %v3929_v9  ;;  %v3983_v43 = vcombine.high %v212_v36, %v216_v37  ;;  %v3985_v9 = vcombine.high %v213_v39, %v217_v40  ;;  %v264_v28 = vld [vmem:[#allocation5 + $0x470] sm:$0xff]  ;;  %v265_v30 = vld [vmem:[#allocation5 + $0x478] sm:$0xff] }
 0x12b   :  { %2857 = vmatpush1.bf16.msra.mxu0 %v3926_v31  ;;  %3021 = vmatpush1.bf16.msra.mxu1 %v3928_v50  ;;  %v3982_v31 = vcombine.low %v212_v36, %v216_v37  ;;  %v3984_v50 = vcombine.low %v213_v39, %v217_v40  ;;  %v268_v36 = vld [vmem:[#allocation5 + $0x490] sm:$0xff]  ;;  %v269_v39 = vld [vmem:[#allocation5 + $0x498] sm:$0xff] }
 0x12c   :  { %2858 = vmatprep.subr.bf16.mxu0 %v3935_v51  ;;  %3022 = vmatprep.subr.bf16.mxu1 %v3937_v52  ;;  %v3991_v51 = vcombine.high %v220_v45, %v224_v46  ;;  %v3993_v52 = vcombine.high %v221_v49, %v225_v53  ;;  %v272_v37 = vld [vmem:[#allocation5 + $0x4b0] sm:$0xff]  ;;  %v273_v40 = vld [vmem:[#allocation5 + $0x4b8] sm:$0xff] }
 0x12f   :  { %2859 = vmatpush1.bf16.msra.mxu0 %v3934_v16  ;;  %3023 = vmatpush1.bf16.msra.mxu1 %v3936_v60  ;;  %v3990_v16 = vcombine.low %v220_v45, %v224_v46  ;;  %v3992_v60 = vcombine.low %v221_v49, %v225_v53  ;;  %v276_v45 = vld [vmem:[#allocation5 + $0x4d0] sm:$0xff]  ;;  %v277_v49 = vld [vmem:[#allocation5 + $0x4d8] sm:$0xff] }
 0x130   :  { %2860 = vmatprep.subr.bf16.mxu0 %v3943_v61  ;;  %3024 = vmatprep.subr.bf16.mxu1 %v3945_v62  ;;  %v3999_v61 = vcombine.high %v228_v54, %v232_v55  ;;  %v4001_v62 = vcombine.high %v229_v57, %v233_v58  ;;  %v280_v46 = vld [vmem:[#allocation5 + $0x4f0] sm:$0xff]  ;;  %v281_v53 = vld [vmem:[#allocation5 + $0x4f8] sm:$0xff] }
 0x133   :  { %2861 = vmatpush1.bf16.msra.mxu0 %v3942_v5  ;;  %3025 = vmatpush1.bf16.msra.mxu1 %v3944_v6  ;;  %v3998_v5 = vcombine.low %v228_v54, %v232_v55  ;;  %v4000_v6 = vcombine.low %v229_v57, %v233_v58  ;;  %v288_v54 = vld [vmem:[#allocation5 + $0x530] sm:$0xff]  ;;  %v285_v55 = vld [vmem:[#allocation5 + $0x518] sm:$0xff]  ;;  %v4046_v58 = vcombine.low %v276_v45, %v280_v46 }
 0x134   :  { %2862 = vmatprep.subr.bf16.mxu0 %v3951_v7  ;;  %3026 = vmatprep.subr.bf16.mxu1 %v3953_v8  ;;  %v4007_v7 = vcombine.high %v236_v1, %v240_v2  ;;  %v4009_v8 = vcombine.high %v237_v3, %v241_v4  ;;  %v289_v57 = vld [vmem:[#allocation5 + $0x538] sm:$0xff] }
 0x137   :  { %2863 = vmatpush1.bf16.msra.mxu0 %v3950_v15  ;;  %3027 = vmatpush1.bf16.msra.mxu1 %v3952_v17  ;;  %v4006_v15 = vcombine.low %v236_v1, %v240_v2  ;;  %v4008_v17 = vcombine.low %v237_v3, %v241_v4  ;;  %v293_v1 = vld [vmem:[#allocation5 + $0x558] sm:$0xff]  ;;  %v4056_v4 = vcombine.low %v285_v55, %v289_v57 }
 0x138   :  { %2864 = vmatprep.subr.bf16.mxu0 %v3959_v18  ;;  %3028 = vmatprep.subr.bf16.mxu1 %v3961_v19  ;;  %v4015_v18 = vcombine.high %v244_v10, %v248_v11  ;;  %v4017_v19 = vcombine.high %v245_v13, %v249_v14  ;;  %v297_v2 = vld [vmem:[#allocation5 + $0x578] sm:$0xff] }
 0x13b   :  { %2865 = vmatpush1.bf16.msra.mxu0 %v3958_v47  ;;  %3029 = vmatpush1.bf16.msra.mxu1 %v3960_v23  ;;  %v4014_v47 = vcombine.low %v244_v10, %v248_v11  ;;  %v4016_v23 = vcombine.low %v245_v13, %v249_v14  ;;  %v301_v10 = vld [vmem:[#allocation5 + $0x598] sm:$0xff]  ;;  %v4064_v14 = vcombine.low %v293_v1, %v297_v2 }
 0x13c   :  { %2866 = vmatprep.subr.bf16.mxu0 %v3967_v24  ;;  %3030 = vmatprep.subr.bf16.mxu1 %v3969_v26  ;;  %v4023_v24 = vcombine.high %v252_v59, %v256_v20  ;;  %v4025_v26 = vcombine.high %v253_v21, %v257_v22  ;;  %v305_v11 = vld [vmem:[#allocation5 + $0x5b8] sm:$0xff] }
 0x13f   :  { %2867 = vmatpush1.bf16.msra.mxu0 %v3966_v32  ;;  %3031 = vmatpush1.bf16.msra.mxu1 %v3968_v33  ;;  %v4022_v32 = vcombine.low %v252_v59, %v256_v20  ;;  %v4024_v33 = vcombine.low %v253_v21, %v257_v22  ;;  %v309_v59 = vld [vmem:[#allocation5 + $0x5d8] sm:$0xff]  ;;  %v4072_v22 = vcombine.low %v301_v10, %v305_v11 }
 0x140   :  { %2868 = vmatprep.subr.bf16.mxu0 %v3975_v34  ;;  %3032 = vmatprep.subr.bf16.mxu1 %v3977_v63  ;;  %v4031_v34 = vcombine.high %v260_v27, %v264_v28  ;;  %v4033_v63 = vcombine.high %v261_v29, %v265_v30  ;;  %v313_v20 = vld [vmem:[#allocation5 + $0x5f8] sm:$0xff] }
 0x143   :  { %2869 = vmatpush1.bf16.msra.mxu0 %v3974_v41  ;;  %3033 = vmatpush1.bf16.msra.mxu1 %v3976_v42  ;;  %v4030_v41 = vcombine.low %v260_v27, %v264_v28  ;;  %v4032_v42 = vcombine.low %v261_v29, %v265_v30  ;;  %v317_v27 = vld [vmem:[#allocation5 + $0x618] sm:$0xff]  ;;  %v4080_v30 = vcombine.low %v309_v59, %v313_v20 }
 0x144   :  { %2870 = vmatprep.subr.bf16.mxu0 %v3983_v43  ;;  %3034 = vmatprep.subr.bf16.mxu1 %v3985_v9  ;;  %v4039_v43 = vcombine.high %v268_v36, %v272_v37  ;;  %v4041_v9 = vcombine.high %v269_v39, %v273_v40  ;;  %v321_v28 = vld [vmem:[#allocation5 + $0x638] sm:$0xff] }
 0x147   :  { %2871 = vmatpush1.bf16.msra.mxu0 %v3982_v31  ;;  %3035 = vmatpush1.bf16.msra.mxu1 %v3984_v50  ;;  %v4038_v31 = vcombine.low %v268_v36, %v272_v37  ;;  %v4047_v50 = vcombine.high %v276_v45, %v280_v46  ;;  %v325_v36 = vld [vmem:[#allocation5 + $0x658] sm:$0xff] }
 0x148   :  { %2872 = vmatprep.subr.bf16.mxu0 %v3991_v51  ;;  %3036 = vmatprep.subr.bf16.mxu1 %v3993_v52  ;;  %v4049_v51 = vcombine.high %v277_v49, %v281_v53  ;;  %v284_v52 = vld [vmem:[#allocation5 + $0x510] sm:$0xff]  ;;  %v329_v37 = vld [vmem:[#allocation5 + $0x678] sm:$0xff] }
 0x149   :  { %v4054_v3 = vcombine.low %v284_v52, %v288_v54  ;;  %v333_v45 = vld [vmem:[#allocation5 + $0x698] sm:$0xff] }
 0x14a   :  { %v337_v46 = vld [vmem:[#allocation5 + $0x6b8] sm:$0xff] }
 0x14b   :  { %2873 = vmatpush1.bf16.msra.mxu0 %v3990_v16  ;;  %3037 = vmatpush1.bf16.msra.mxu1 %v3992_v60  ;;  %v4048_v16 = vcombine.low %v277_v49, %v281_v53  ;;  %v4055_v60 = vcombine.high %v284_v52, %v288_v54  ;;  %v4096_v53 = vcombine.low %v325_v36, %v329_v37  ;;  %v341_v52 = vld [vmem:[#allocation5 + $0x6d8] sm:$0xff] }
 0x14c   :  { %2874 = vmatprep.subr.bf16.mxu0 %v3999_v61  ;;  %3038 = vmatprep.subr.bf16.mxu1 %v4001_v62  ;;  %v292_v61 = vld [vmem:[#allocation5 + $0x550] sm:$0xff]  ;;  %v345_v54 = vld [vmem:[#allocation5 + $0x6f8] sm:$0xff] }
 0x14d   :  { %v296_v62 = vld [vmem:[#allocation5 + $0x570] sm:$0xff] }
 0x14e   :  { %v4062_v13 = vcombine.low %v292_v61, %v296_v62 }
 0x14f   :  { %2875 = vmatpush1.bf16.msra.mxu0 %v3998_v5  ;;  %3039 = vmatpush1.bf16.msra.mxu1 %v4000_v6  ;;  %v4063_v5 = vcombine.high %v292_v61, %v296_v62  ;;  %v4065_v6 = vcombine.high %v293_v1, %v297_v2  ;;  %v349_v61 = vld [vmem:[#allocation5 + $0x718] sm:$0xff]  ;;  %v4112_v2 = vcombine.low %v341_v52, %v345_v54 }
 0x150   :  { %2876 = vmatprep.subr.bf16.mxu0 %v4007_v7  ;;  %3040 = vmatprep.subr.bf16.mxu1 %v4009_v8  ;;  %v300_v7 = vld [vmem:[#allocation5 + $0x590] sm:$0xff]  ;;  %v353_v62 = vld [vmem:[#allocation5 + $0x738] sm:$0xff] }
 0x151   :  { %v304_v8 = vld [vmem:[#allocation5 + $0x5b0] sm:$0xff] }
 0x152   :  { %v4070_v21 = vcombine.low %v300_v7, %v304_v8 }
 0x153   :  { %2877 = vmatpush1.bf16.msra.mxu0 %v4006_v15  ;;  %3041 = vmatpush1.bf16.msra.mxu1 %v4008_v17  ;;  %v4071_v15 = vcombine.high %v300_v7, %v304_v8  ;;  %v4073_v17 = vcombine.high %v301_v10, %v305_v11  ;;  %v357_v7 = vld [vmem:[#allocation5 + $0x758] sm:$0xff]  ;;  %v4120_v11 = vcombine.low %v349_v61, %v353_v62 }
 0x154   :  { %2878 = vmatprep.subr.bf16.mxu0 %v4015_v18  ;;  %3042 = vmatprep.subr.bf16.mxu1 %v4017_v19  ;;  %v308_v18 = vld [vmem:[#allocation5 + $0x5d0] sm:$0xff]  ;;  %v361_v8 = vld [vmem:[#allocation5 + $0x778] sm:$0xff] }
 0x155   :  { %v312_v19 = vld [vmem:[#allocation5 + $0x5f0] sm:$0xff] }
 0x156   :  { %v4078_v29 = vcombine.low %v308_v18, %v312_v19 }
 0x157   :  { %2879 = vmatpush1.bf16.msra.mxu0 %v4014_v47  ;;  %3043 = vmatpush1.bf16.msra.mxu1 %v4016_v23  ;;  %v4079_v47 = vcombine.high %v308_v18, %v312_v19  ;;  %v4081_v23 = vcombine.high %v309_v59, %v313_v20  ;;  %v365_v18 = vld [vmem:[#allocation5 + $0x798] sm:$0xff]  ;;  %v4128_v20 = vcombine.low %v357_v7, %v361_v8 }
 0x158   :  { %2889 = vmatprep.subr.bf16.mxu0 %v4023_v24  ;;  %3053 = vmatprep.subr.bf16.mxu1 %v4025_v26  ;;  %v316_v24 = vld [vmem:[#allocation5 + $0x610] sm:$0xff]  ;;  %v369_v19 = vld [vmem:[#allocation5 + $0x7b8] sm:$0xff] }
 0x159   :  { %v320_v26 = vld [vmem:[#allocation5 + $0x630] sm:$0xff] }
 0x15a   :  { %2881 = vmatmul.mubr.bf16.vlgmr.msra.gmra.mrb[4].mxu0 %v4801_v25  ;;  %3045 = vmatmul.mubr.bf16.vlgmr.msra.gmra.mrb[4].mxu1 %v4801_v25  ;;  %v4040_v25 = vcombine.low %v269_v39, %v273_v40  ;;  %v4086_v39 = vcombine.low %v316_v24, %v320_v26  ;;  %v4088_v40 = vcombine.low %v317_v27, %v321_v28 }
 0x15b   :  { %2890 = vmatpush1.bf16.msra.mxu0 %v4022_v32  ;;  %3054 = vmatpush1.bf16.msra.mxu1 %v4024_v33  ;;  %v4087_v32 = vcombine.high %v316_v24, %v320_v26  ;;  %v4089_v33 = vcombine.high %v317_v27, %v321_v28  ;;  %v373_v24 = vld [vmem:[#allocation5 + $0x7d8] sm:$0xff]  ;;  %v4136_v28 = vcombine.low %v365_v18, %v369_v19 }
 0x15c   :  { %2891 = vmatprep.subr.bf16.mxu0 %v4031_v34  ;;  %3055 = vmatprep.subr.bf16.mxu1 %v4033_v63  ;;  %v324_v34 = vld [vmem:[#allocation5 + $0x650] sm:$0xff]  ;;  %v377_v26 = vld [vmem:[#allocation5 + $0x7f8] sm:$0xff] }
 0x15d   :  { %2921 = vmatprep.mubr.bf16.mxu0 %v4805_v35  ;;  %3085 = vmatprep.mubr.bf16.mxu1 %v4805_v35  ;;  %v4057_v35 = vcombine.high %v285_v55, %v289_v57  ;;  %v328_v63 = vld [vmem:[#allocation5 + $0x670] sm:$0xff]  ;;  %v4104_v57 = vcombine.low %v333_v45, %v337_v46 }
 0x15e   :  { %v4094_v49 = vcombine.low %v324_v34, %v328_v63 }
 0x15f   :  { %2892 = vmatpush1.bf16.msra.mxu0 %v4030_v41  ;;  %3056 = vmatpush1.bf16.msra.mxu1 %v4032_v42  ;;  %v4095_v41 = vcombine.high %v324_v34, %v328_v63  ;;  %v4097_v42 = vcombine.high %v325_v36, %v329_v37  ;;  %v381_v34 = vld [vmem:[#allocation5 + $0x818] sm:$0xff]  ;;  %v4144_v37 = vcombine.low %v373_v24, %v377_v26 }
 0x160   :  { %2893 = vmatprep.subr.bf16.mxu0 %v4039_v43  ;;  %3057 = vmatprep.subr.bf16.mxu1 %v4041_v9  ;;  %v332_v43 = vld [vmem:[#allocation5 + $0x690] sm:$0xff]  ;;  %v385_v63 = vld [vmem:[#allocation5 + $0x838] sm:$0xff] }
 0x161   :  { %v336_v9 = vld [vmem:[#allocation5 + $0x6b0] sm:$0xff] }
 0x162   :  { %v4102_v55 = vcombine.low %v332_v43, %v336_v9 }
 0x163   :  { %2894 = vmatpush1.bf16.msra.mxu0 %v4038_v31  ;;  %3058 = vmatpush1.bf16.msra.mxu1 %v4040_v25  ;;  %v4103_v31 = vcombine.high %v332_v43, %v336_v9  ;;  %v4105_v25 = vcombine.high %v333_v45, %v337_v46  ;;  %v389_v43 = vld [vmem:[#allocation5 + $0x858] sm:$0xff]  ;;  %v4152_v46 = vcombine.low %v381_v34, %v385_v63 }
 0x164   :  { %2895 = vmatprep.subr.bf16.mxu0 %v4047_v50  ;;  %3059 = vmatprep.subr.bf16.mxu1 %v4049_v51  ;;  %v340_v50 = vld [vmem:[#allocation5 + $0x6d0] sm:$0xff]  ;;  %v393_v9 = vld [vmem:[#allocation5 + $0x878] sm:$0xff] }
 0x165   :  { %v344_v51 = vld [vmem:[#allocation5 + $0x6f0] sm:$0xff] }
 0x166   :  { %v4110_v1 = vcombine.low %v340_v50, %v344_v51 }
 0x167   :  { %2896 = vmatpush1.bf16.msra.mxu0 %v4046_v58  ;;  %3060 = vmatpush1.bf16.msra.mxu1 %v4048_v16  ;;  %v4111_v58 = vcombine.high %v340_v50, %v344_v51  ;;  %v4113_v16 = vcombine.high %v341_v52, %v345_v54  ;;  %v397_v50 = vld [vmem:[#allocation5 + $0x898] sm:$0xff]  ;;  %v4160_v54 = vcombine.low %v389_v43, %v393_v9 }
 0x168   :  { %2897 = vmatprep.subr.bf16.mxu0 %v4055_v60  ;;  %3061 = vmatprep.subr.bf16.mxu1 %v4057_v35  ;;  %v348_v60 = vld [vmem:[#allocation5 + $0x710] sm:$0xff]  ;;  %v401_v51 = vld [vmem:[#allocation5 + $0x8b8] sm:$0xff] }
 0x169   :  { %v352_v35 = vld [vmem:[#allocation5 + $0x730] sm:$0xff] }
 0x16a   :  { %v4118_v10 = vcombine.low %v348_v60, %v352_v35 }
 0x16b   :  { %2898 = vmatpush1.bf16.msra.mxu0 %v4054_v3  ;;  %3062 = vmatpush1.bf16.msra.mxu1 %v4056_v4  ;;  %v4119_v3 = vcombine.high %v348_v60, %v352_v35  ;;  %v4121_v4 = vcombine.high %v349_v61, %v353_v62  ;;  %v405_v60 = vld [vmem:[#allocation5 + $0x8d8] sm:$0xff] }
 0x16c   :  { %2899 = vmatprep.subr.bf16.mxu0 %v4063_v5  ;;  %3063 = vmatprep.subr.bf16.mxu1 %v4065_v6  ;;  %v356_v5 = vld [vmem:[#allocation5 + $0x750] sm:$0xff]  ;;  %v409_v35 = vld [vmem:[#allocation5 + $0x8f8] sm:$0xff] }
 0x16d   :  { %v360_v6 = vld [vmem:[#allocation5 + $0x770] sm:$0xff] }
 0x16e   :  { %v4126_v59 = vcombine.low %v356_v5, %v360_v6 }
 0x16f   :  { %2900 = vmatpush1.bf16.msra.mxu0 %v4062_v13  ;;  %3064 = vmatpush1.bf16.msra.mxu1 %v4064_v14  ;;  %v4127_v13 = vcombine.high %v356_v5, %v360_v6  ;;  %v4129_v14 = vcombine.high %v357_v7, %v361_v8  ;;  %v417_v5 = vld [vmem:[#allocation5 + $0x938] sm:$0xff]  ;;  %v4176_v7 = vcombine.low %v405_v60, %v409_v35 }
 0x170   :  { %2901 = vmatprep.subr.bf16.mxu0 %v4071_v15  ;;  %3065 = vmatprep.subr.bf16.mxu1 %v4073_v17  ;;  %v364_v15 = vld [vmem:[#allocation5 + $0x790] sm:$0xff] }
 0x171   :  { %v368_v17 = vld [vmem:[#allocation5 + $0x7b0] sm:$0xff] }
 0x172   :  { %v4134_v27 = vcombine.low %v364_v15, %v368_v17 }
 0x173   :  { %2902 = vmatpush1.bf16.msra.mxu0 %v4070_v21  ;;  %3066 = vmatpush1.bf16.msra.mxu1 %v4072_v22  ;;  %v4135_v21 = vcombine.high %v364_v15, %v368_v17  ;;  %v4137_v22 = vcombine.high %v365_v18, %v369_v19 }
 0x174   :  { %2903 = vmatprep.subr.bf16.mxu0 %v4079_v47  ;;  %3067 = vmatprep.subr.bf16.mxu1 %v4081_v23  ;;  %v372_v47 = vld [vmem:[#allocation5 + $0x7d0] sm:$0xff] }
 0x175   :  { %v376_v23 = vld [vmem:[#allocation5 + $0x7f0] sm:$0xff] }
 0x176   :  { %v4142_v36 = vcombine.low %v372_v47, %v376_v23 }
 0x177   :  { %2904 = vmatpush1.bf16.msra.mxu0 %v4078_v29  ;;  %3068 = vmatpush1.bf16.msra.mxu1 %v4080_v30  ;;  %v4143_v29 = vcombine.high %v372_v47, %v376_v23  ;;  %v4145_v30 = vcombine.high %v373_v24, %v377_v26 }
 0x178   :  { %2905 = vmatprep.subr.bf16.mxu0 %v4087_v32  ;;  %3069 = vmatprep.subr.bf16.mxu1 %v4089_v33  ;;  %v380_v32 = vld [vmem:[#allocation5 + $0x810] sm:$0xff] }
 0x179   :  { %v384_v33 = vld [vmem:[#allocation5 + $0x830] sm:$0xff] }
 0x17a   :  { %v4150_v45 = vcombine.low %v380_v32, %v384_v33 }
 0x17b   :  { %2906 = vmatpush1.bf16.msra.mxu0 %v4086_v39  ;;  %3070 = vmatpush1.bf16.msra.mxu1 %v4088_v40  ;;  %v4151_v39 = vcombine.high %v380_v32, %v384_v33  ;;  %v4153_v40 = vcombine.high %v381_v34, %v385_v63 }
 0x17c   :  { %2907 = vmatprep.subr.bf16.mxu0 %v4095_v41  ;;  %3071 = vmatprep.subr.bf16.mxu1 %v4097_v42  ;;  %v388_v41 = vld [vmem:[#allocation5 + $0x850] sm:$0xff] }
 0x17d   :  { %v392_v42 = vld [vmem:[#allocation5 + $0x870] sm:$0xff] }
 0x17e   :  { %v4158_v52 = vcombine.low %v388_v41, %v392_v42 }
 0x17f   :  { %2908 = vmatpush1.bf16.msra.mxu0 %v4094_v49  ;;  %3072 = vmatpush1.bf16.msra.mxu1 %v4096_v53  ;;  %v4159_v49 = vcombine.high %v388_v41, %v392_v42  ;;  %v4161_v53 = vcombine.high %v389_v43, %v393_v9 }
 0x180   :  { %2909 = vmatprep.subr.bf16.mxu0 %v4103_v31  ;;  %3073 = vmatprep.subr.bf16.mxu1 %v4105_v25  ;;  %v396_v31 = vld [vmem:[#allocation5 + $0x890] sm:$0xff] }
 0x181   :  { %v400_v25 = vld [vmem:[#allocation5 + $0x8b0] sm:$0xff] }
 0x182   :  { %v4166_v61 = vcombine.low %v396_v31, %v400_v25 }
 0x183   :  { %2910 = vmatpush1.bf16.msra.mxu0 %v4102_v55  ;;  %3074 = vmatpush1.bf16.msra.mxu1 %v4104_v57  ;;  %v4167_v55 = vcombine.high %v396_v31, %v400_v25  ;;  %v4169_v57 = vcombine.high %v397_v50, %v401_v51 }
 0x184   :  { %2911 = vmatprep.subr.bf16.mxu0 %v4111_v58  ;;  %3075 = vmatprep.subr.bf16.mxu1 %v4113_v16  ;;  %v404_v58 = vld [vmem:[#allocation5 + $0x8d0] sm:$0xff] }
 0x185   :  { %v408_v16 = vld [vmem:[#allocation5 + $0x8f0] sm:$0xff] }
 0x186   :  { %v4175_v62 = vcombine.high %v404_v58, %v408_v16  ;;  %v4174_v6 = vcombine.low %v404_v58, %v408_v16 }
 0x187   :  { %2912 = vmatpush1.bf16.msra.mxu0 %v4110_v1  ;;  %3076 = vmatpush1.bf16.msra.mxu1 %v4112_v2  ;;  %v4177_v1 = vcombine.high %v405_v60, %v409_v35  ;;  %v412_v2 = vld [vmem:[#allocation5 + $0x910] sm:$0xff] }
 0x188   :  { %2913 = vmatprep.subr.bf16.mxu0 %v4119_v3  ;;  %3077 = vmatprep.subr.bf16.mxu1 %v4121_v4  ;;  %v416_v3 = vld [vmem:[#allocation5 + $0x930] sm:$0xff]  ;;  %v413_v4 = vld [vmem:[#allocation5 + $0x918] sm:$0xff] }
 0x189   :  { %v4183_v8 = vcombine.high %v412_v2, %v416_v3  ;;  %v4182_v15 = vcombine.low %v412_v2, %v416_v3  ;;  %v4184_v17 = vcombine.low %v413_v4, %v417_v5 }
 0x18b   :  { %2914 = vmatpush1.bf16.msra.mxu0 %v4118_v10  ;;  %3078 = vmatpush1.bf16.msra.mxu1 %v4120_v11  ;;  %v420_v10 = vld [vmem:[#allocation5 + $0x950] sm:$0xff] }
 0x18c   :  { %2915 = vmatprep.subr.bf16.mxu0 %v4127_v13  ;;  %3079 = vmatprep.subr.bf16.mxu1 %v4129_v14  ;;  %v424_v11 = vld [vmem:[#allocation5 + $0x970] sm:$0xff]  ;;  %v421_v13 = vld [vmem:[#allocation5 + $0x958] sm:$0xff] }
 0x18d   :  { %v425_v14 = vld [vmem:[#allocation5 + $0x978] sm:$0xff]  ;;  %v4191_v18 = vcombine.high %v420_v10, %v424_v11  ;;  %v4190_v47 = vcombine.low %v420_v10, %v424_v11 }
 0x18e   :  { %v4193_v19 = vcombine.high %v421_v13, %v425_v14  ;;  %v4192_v23 = vcombine.low %v421_v13, %v425_v14 }
 0x18f   :  { %2916 = vmatpush1.bf16.msra.mxu0 %v4126_v59  ;;  %3080 = vmatpush1.bf16.msra.mxu1 %v4128_v20  ;;  %v428_v59 = vld [vmem:[#allocation5 + $0x990] sm:$0xff] }
 0x190   :  { %2917 = vmatprep.subr.bf16.mxu0 %v4135_v21  ;;  %3081 = vmatprep.subr.bf16.mxu1 %v4137_v22  ;;  %v432_v20 = vld [vmem:[#allocation5 + $0x9b0] sm:$0xff]  ;;  %v429_v21 = vld [vmem:[#allocation5 + $0x998] sm:$0xff] }
 0x191   :  { %v433_v22 = vld [vmem:[#allocation5 + $0x9b8] sm:$0xff]  ;;  %v4199_v24 = vcombine.high %v428_v59, %v432_v20  ;;  %v4198_v32 = vcombine.low %v428_v59, %v432_v20 }
 0x192   :  { %v4201_v26 = vcombine.high %v429_v21, %v433_v22  ;;  %v4200_v33 = vcombine.low %v429_v21, %v433_v22 }
 0x193   :  { %2918 = vmatpush1.bf16.msra.mxu0 %v4134_v27  ;;  %3082 = vmatpush1.bf16.msra.mxu1 %v4136_v28  ;;  %v436_v27 = vld [vmem:[#allocation5 + $0x9d0] sm:$0xff] }
 0x194   :  { %2919 = vmatprep.subr.bf16.mxu0 %v4143_v29  ;;  %3083 = vmatprep.subr.bf16.mxu1 %v4145_v30  ;;  %v440_v28 = vld [vmem:[#allocation5 + $0x9f0] sm:$0xff]  ;;  %v437_v29 = vld [vmem:[#allocation5 + $0x9d8] sm:$0xff] }
 0x195   :  { %v441_v30 = vld [vmem:[#allocation5 + $0x9f8] sm:$0xff]  ;;  %v4207_v34 = vcombine.high %v436_v27, %v440_v28  ;;  %v4206_v41 = vcombine.low %v436_v27, %v440_v28 }
 0x196   :  { %v4209_v63 = vcombine.high %v437_v29, %v441_v30  ;;  %v4208_v42 = vcombine.low %v437_v29, %v441_v30 }
 0x197   :  { %2920 = vmatpush1.bf16.msra.mxu0 %v4142_v36  ;;  %3084 = vmatpush1.bf16.msra.mxu1 %v4144_v37  ;;  %v444_v36 = vld [vmem:[#allocation5 + $0xa10] sm:$0xff] }
 0x198   :  { %2930 = vmatprep.subr.bf16.mxu0 %v4151_v39  ;;  %3094 = vmatprep.subr.bf16.mxu1 %v4153_v40  ;;  %v448_v37 = vld [vmem:[#allocation5 + $0xa30] sm:$0xff]  ;;  %v445_v39 = vld [vmem:[#allocation5 + $0xa18] sm:$0xff] }
 0x199   :  { %v449_v40 = vld [vmem:[#allocation5 + $0xa38] sm:$0xff]  ;;  %v4215_v43 = vcombine.high %v444_v36, %v448_v37  ;;  %v4214_v31 = vcombine.low %v444_v36, %v448_v37 }
 0x19a   :  { %2922 = vmatmul.mubr.bf16.vlgmr.msra.gmra.mrb[4].mxu0 %v4824_v48  ;;  %3086 = vmatmul.mubr.bf16.vlgmr.msra.gmra.mrb[4].mxu1 %v4824_v48  ;;  %v4168_v48 = vcombine.low %v397_v50, %v401_v51  ;;  %v4217_v9 = vcombine.high %v445_v39, %v449_v40  ;;  %v4216_v25 = vcombine.low %v445_v39, %v449_v40 }
 0x19b   :  { %2931 = vmatpush1.bf16.msra.mxu0 %v4150_v45  ;;  %3095 = vmatpush1.bf16.msra.mxu1 %v4152_v46  ;;  %v452_v45 = vld [vmem:[#allocation5 + $0xa50] sm:$0xff] }
 0x19c   :  { %2932 = vmatprep.subr.bf16.mxu0 %v4159_v49  ;;  %3096 = vmatprep.subr.bf16.mxu1 %v4161_v53  ;;  %v456_v46 = vld [vmem:[#allocation5 + $0xa70] sm:$0xff]  ;;  %v453_v49 = vld [vmem:[#allocation5 + $0xa58] sm:$0xff] }
 0x19d   :  { %2962 = vmatprep.mubr.bf16.mxu0 %v4826_v56  ;;  %3126 = vmatprep.mubr.bf16.mxu1 %v4826_v56  ;;  %v4185_v56 = vcombine.high %v413_v4, %v417_v5  ;;  %v457_v53 = vld [vmem:[#allocation5 + $0xa78] sm:$0xff]  ;;  %v4223_v50 = vcombine.high %v452_v45, %v456_v46  ;;  %v4222_v58 = vcombine.low %v452_v45, %v456_v46 }
 0x19e   :  { %v4225_v51 = vcombine.high %v453_v49, %v457_v53  ;;  %v4224_v16 = vcombine.low %v453_v49, %v457_v53 }
 0x19f   :  { %2933 = vmatpush1.bf16.msra.mxu0 %v4158_v52  ;;  %3097 = vmatpush1.bf16.msra.mxu1 %v4160_v54  ;;  %v460_v52 = vld [vmem:[#allocation5 + $0xa90] sm:$0xff] }
 0x1a0   :  { %2934 = vmatprep.subr.bf16.mxu0 %v4167_v55  ;;  %3098 = vmatprep.subr.bf16.mxu1 %v4169_v57  ;;  %v464_v54 = vld [vmem:[#allocation5 + $0xab0] sm:$0xff]  ;;  %v461_v55 = vld [vmem:[#allocation5 + $0xa98] sm:$0xff] }
 0x1a1   :  { %v465_v57 = vld [vmem:[#allocation5 + $0xab8] sm:$0xff]  ;;  %v4231_v60 = vcombine.high %v460_v52, %v464_v54  ;;  %v4230_v2 = vcombine.low %v460_v52, %v464_v54 }
 0x1a2   :  { %v4233_v35 = vcombine.high %v461_v55, %v465_v57  ;;  %v4232_v3 = vcombine.low %v461_v55, %v465_v57  ;;  %v4508_v52 = vld [vmem:[%s5091_s3] sm:$0xff]   ;;  %v4511_v55 = vld [vmem:[%s5091_s3 + $0xc8] sm:$0xff]   ;;  %v522_v57 = vsub.s32 1, %v4775_v44 }
 0x1a3   :  { %2935 = vmatpush1.bf16.msra.mxu0 %v4166_v61  ;;  %3099 = vmatpush1.bf16.msra.mxu1 %v4168_v48  ;;  %v468_v61 = vld [vmem:[#allocation5 + $0xad0] sm:$0xff] }
 0x1a4   :  { %2936 = vmatprep.subr.bf16.mxu0 %v4175_v62  ;;  %3100 = vmatprep.subr.bf16.mxu1 %v4177_v1  ;;  %v472_v48 = vld [vmem:[#allocation5 + $0xaf0] sm:$0xff]  ;;  %v469_v62 = vld [vmem:[#allocation5 + $0xad8] sm:$0xff] }
 0x1a5   :  { %v473_v1 = vld [vmem:[#allocation5 + $0xaf8] sm:$0xff]  ;;  %v4239_v4 = vcombine.high %v468_v61, %v472_v48  ;;  %v4238_v10 = vcombine.low %v468_v61, %v472_v48  ;;  %v4516_v61 = vld [vmem:[%s5091_s3 + $0x10] sm:$0xff]  }
 0x1a6   :  { %v4241_v5 = vcombine.high %v469_v62, %v473_v1  ;;  %v4240_v11 = vcombine.low %v469_v62, %v473_v1  ;;  %v4509_v54 = vld [vmem:[%s5091_s3 + $0x80] sm:$0xff]   ;;  %v4517_v62 = vld [vmem:[%s5091_s3 + $0x90] sm:$0xff]  }
 0x1a7   :  { %2937 = vmatpush1.bf16.msra.mxu0 %v4174_v6  ;;  %3101 = vmatpush1.bf16.msra.mxu1 %v4176_v7  ;;  %v476_v6 = vld [vmem:[#allocation5 + $0xb10] sm:$0xff] }
 0x1a8   :  { %2938 = vmatprep.subr.bf16.mxu0 %v4183_v8  ;;  %3102 = vmatprep.subr.bf16.mxu1 %v4185_v56  ;;  %v480_v7 = vld [vmem:[#allocation5 + $0xb30] sm:$0xff]  ;;  %v477_v8 = vld [vmem:[#allocation5 + $0xb18] sm:$0xff] }
 0x1a9   :  { %v481_v56 = vld [vmem:[#allocation5 + $0xb38] sm:$0xff]  ;;  %v4247_v13 = vcombine.high %v476_v6, %v480_v7  ;;  %v4246_v59 = vcombine.low %v476_v6, %v480_v7 }
 0x1aa   :  { %v4249_v14 = vcombine.high %v477_v8, %v481_v56  ;;  %v4248_v20 = vcombine.low %v477_v8, %v481_v56 }
 0x1ab   :  { %2939 = vmatpush1.bf16.msra.mxu0 %v4182_v15  ;;  %3103 = vmatpush1.bf16.msra.mxu1 %v4184_v17  ;;  %v484_v15 = vld [vmem:[#allocation5 + $0xb50] sm:$0xff] }
 0x1ac   :  { %2940 = vmatprep.subr.bf16.mxu0 %v4191_v18  ;;  %3104 = vmatprep.subr.bf16.mxu1 %v4193_v19  ;;  %v488_v17 = vld [vmem:[#allocation5 + $0xb70] sm:$0xff]  ;;  %v485_v18 = vld [vmem:[#allocation5 + $0xb58] sm:$0xff] }
 0x1ad   :  { %v489_v19 = vld [vmem:[#allocation5 + $0xb78] sm:$0xff]  ;;  %v4255_v21 = vcombine.high %v484_v15, %v488_v17  ;;  %v4254_v27 = vcombine.low %v484_v15, %v488_v17  ;;  %v4521_v15 = vld [vmem:[%s5091_s3 + $0x98] sm:$0xff]  }
 0x1ae   :  { %v4257_v22 = vcombine.high %v485_v18, %v489_v19  ;;  %v4256_v28 = vcombine.low %v485_v18, %v489_v19  ;;  %v4522_v17 = vld [vmem:[%s5091_s3 + $0x60] sm:$0xff]  }
 0x1af   :  { %2941 = vmatpush1.bf16.msra.mxu0 %v4190_v47  ;;  %3105 = vmatpush1.bf16.msra.mxu1 %v4192_v23  ;;  %v492_v47 = vld [vmem:[#allocation5 + $0xb90] sm:$0xff] }
 0x1b0   :  { %2942 = vmatprep.subr.bf16.mxu0 %v4199_v24  ;;  %3106 = vmatprep.subr.bf16.mxu1 %v4201_v26  ;;  %v496_v23 = vld [vmem:[#allocation5 + $0xbb0] sm:$0xff]  ;;  %v493_v24 = vld [vmem:[#allocation5 + $0xb98] sm:$0xff] }
 0x1b1   :  { %v497_v26 = vld [vmem:[#allocation5 + $0xbb8] sm:$0xff]  ;;  %v4263_v29 = vcombine.high %v492_v47, %v496_v23  ;;  %v4262_v36 = vcombine.low %v492_v47, %v496_v23  ;;  %v518_v47 = vsub.s32 0, %v4775_v44 }
 0x1b2   :  { %v4265_v30 = vcombine.high %v493_v24, %v497_v26  ;;  %v4264_v37 = vcombine.low %v493_v24, %v497_v26  ;;  %v4525_v24 = vld [vmem:[%s5091_s3 + $0xa0] sm:$0xff]   ;;  %v4526_v26 = vld [vmem:[%s5091_s3 + $0x68] sm:$0xff]  }
 0x1b3   :  { %2943 = vmatpush1.bf16.msra.mxu0 %v4198_v32  ;;  %3107 = vmatpush1.bf16.msra.mxu1 %v4200_v33  ;;  %v500_v32 = vld [vmem:[#allocation5 + $0xbd0] sm:$0xff] }
 0x1b4   :  { %2944 = vmatprep.subr.bf16.mxu0 %v4207_v34  ;;  %3108 = vmatprep.subr.bf16.mxu1 %v4209_v63  ;;  %v504_v33 = vld [vmem:[#allocation5 + $0xbf0] sm:$0xff]  ;;  %v501_v34 = vld [vmem:[#allocation5 + $0xbd8] sm:$0xff] }
 0x1b5   :  { %v505_v63 = vld [vmem:[#allocation5 + $0xbf8] sm:$0xff]  ;;  %v4271_v39 = vcombine.high %v500_v32, %v504_v33  ;;  %v4270_v45 = vcombine.low %v500_v32, %v504_v33  ;;  %v4530_v33 = vld [vmem:[%s5091_s3 + $0x70] sm:$0xff]  }
 0x1b6   :  { %v4273_v40 = vcombine.high %v501_v34, %v505_v63  ;;  %v4272_v46 = vcombine.low %v501_v34, %v505_v63  ;;  %v4529_v32 = vld [vmem:[%s5091_s3 + $0xa8] sm:$0xff]   ;;  %v4531_v63 = vld [vmem:[%s5091_s3 + $0xf0] sm:$0xff]  }
 0x1b7   :  { %2945 = vmatpush1.bf16.msra.mxu0 %v4206_v41  ;;  %3109 = vmatpush1.bf16.msra.mxu1 %v4208_v42  ;;  %v508_v41 = vld [vmem:[#allocation5 + $0xc10] sm:$0xff] }
 0x1b8   :  { %2946 = vmatprep.subr.bf16.mxu0 %v4215_v43  ;;  %3110 = vmatprep.subr.bf16.mxu1 %v4217_v9  ;;  %v512_v42 = vld [vmem:[#allocation5 + $0xc30] sm:$0xff]  ;;  %v509_v43 = vld [vmem:[#allocation5 + $0xc18] sm:$0xff] }
 0x1b9   :  { %v513_v9 = vld [vmem:[#allocation5 + $0xc38] sm:$0xff]  ;;  %v4279_v49 = vcombine.high %v508_v41, %v512_v42 }
 0x1ba   :  { %v4281_v53 = vcombine.high %v509_v43, %v513_v9 }
 0x1bb   :  { %2947 = vmatpush1.bf16.msra.mxu0 %v4214_v31  ;;  %3111 = vmatpush1.bf16.msra.mxu1 %v4216_v25  ;;  %v4278_v31 = vcombine.low %v508_v41, %v512_v42  ;;  %v4280_v25 = vcombine.low %v509_v43, %v513_v9  ;;  %v4535_v42 = vld [vmem:[%s5091_s3 + $0xf8] sm:$0xff]  }
 0x1bc   :  { %2948 = vmatprep.subr.bf16.mxu0 %v4223_v50  ;;  %3112 = vmatprep.subr.bf16.mxu1 %v4225_v51  ;;  %v4506_v50 = vld [vmem:[%s5091_s3 + $0x40] sm:$0xff]   ;;  %v4536_v43 = vld [vmem:[%s5091_s3 + $0x38] sm:$0xff]  }
 0x1bd   :  { %v4507_v51 = vld [vmem:[%s5091_s3 + $0xc0] sm:$0xff]  }
 0x1bf   :  { %2949 = vmatpush1.bf16.msra.mxu0 %v4222_v58  ;;  %3113 = vmatpush1.bf16.msra.mxu1 %v4224_v16  ;;  %v4513_v58 = vld [vmem:[%s5091_s3 + $0x88] sm:$0xff]   ;;  %v4514_v16 = vld [vmem:[%s5091_s3 + $0x50] sm:$0xff]  }
 0x1c0   :  { %2950 = vmatprep.subr.bf16.mxu0 %v4231_v60  ;;  %3114 = vmatprep.subr.bf16.mxu1 %v4233_v35  ;;  %v4894_v60 = vld [vmem:[#allocation7] sm:$0xff] }
 0x1c1   :  { %v4515_v35 = vld [vmem:[%s5091_s3 + $0xd0] sm:$0xff]   ;;  %v523_v48 = vrot.slane %v4894_v60, %v522_v57 }
 0x1c2   :  { %v4547_v57 = vld [vmem:[%s5091_s3 + $0x1d0] sm:$0xff]  }
 0x1c3   :  { %2951 = vmatpush1.bf16.msra.mxu0 %v4230_v2  ;;  %3115 = vmatpush1.bf16.msra.mxu1 %v4232_v3  ;;  %v4518_v2 = vld [vmem:[%s5091_s3 + $0x58] sm:$0xff]  }
 0x1c4   :  { %2952 = vmatprep.subr.bf16.mxu0 %v4239_v4  ;;  %3116 = vmatprep.subr.bf16.mxu1 %v4241_v5  ;;  %v4519_v4 = vld [vmem:[%s5091_s3 + $0xd8] sm:$0xff]  }
 0x1c7   :  { %2953 = vmatpush1.bf16.msra.mxu0 %v4238_v10  ;;  %3117 = vmatpush1.bf16.msra.mxu1 %v4240_v11  ;;  %v4520_v10 = vld [vmem:[%s5091_s3 + $0x18] sm:$0xff]  }
 0x1c8   :  { %2954 = vmatprep.subr.bf16.mxu0 %v4247_v13  ;;  %3118 = vmatprep.subr.bf16.mxu1 %v4249_v14 }
 0x1cb   :  { %2955 = vmatpush1.bf16.msra.mxu0 %v4246_v59  ;;  %3119 = vmatpush1.bf16.msra.mxu1 %v4248_v20  ;;  %v4523_v59 = vld [vmem:[%s5091_s3 + $0xe0] sm:$0xff]  }
 0x1cc   :  { %2956 = vmatprep.subr.bf16.mxu0 %v4255_v21  ;;  %3120 = vmatprep.subr.bf16.mxu1 %v4257_v22  ;;  %v4524_v22 = vld [vmem:[%s5091_s3 + $0x20] sm:$0xff]  }
 0x1cf   :  { %2957 = vmatpush1.bf16.msra.mxu0 %v4254_v27  ;;  %3121 = vmatpush1.bf16.msra.mxu1 %v4256_v28  ;;  %v526_v27 = vsub.s32 2, %v4775_v44  ;;  %v4527_v28 = vld [vmem:[%s5091_s3 + $0xe8] sm:$0xff]  }
 0x1d0   :  { %2958 = vmatprep.subr.bf16.mxu0 %v4263_v29  ;;  %3122 = vmatprep.subr.bf16.mxu1 %v4265_v30  ;;  %v4528_v29 = vld [vmem:[%s5091_s3 + $0x28] sm:$0xff]   ;;  %v519_v30 = vrot.slane %v4894_v60, %v518_v47 }
 0x1d1   :  { %v527_v34 = vrot.slane %v4894_v60, %v526_v27 }
 0x1d3   :  { %2959 = vmatpush1.bf16.msra.mxu0 %v4262_v36  ;;  %3123 = vmatpush1.bf16.msra.mxu1 %v4264_v37  ;;  %v4532_v36 = vld [vmem:[%s5091_s3 + $0x30] sm:$0xff]  }
 0x1d4   :  { %2960 = vmatprep.subr.bf16.mxu0 %v4271_v39  ;;  %3124 = vmatprep.subr.bf16.mxu1 %v4273_v40  ;;  %v4533_v39 = vld [vmem:[%s5091_s3 + $0xb0] sm:$0xff]   ;;  %v4534_v40 = vld [vmem:[%s5091_s3 + $0x78] sm:$0xff]  }
 0x1d7   :  { %2961 = vmatpush1.bf16.msra.mxu0 %v4270_v45  ;;  %3125 = vmatpush1.bf16.msra.mxu1 %v4272_v46  ;;  %v4537_v45 = vld [vmem:[%s5091_s3 + $0xb8] sm:$0xff]   ;;  %v4538_v46 = vld [vmem:[%s5091_s3 + $0x140] sm:$0xff]  }
 0x1d8   :  { %2971 = vmatprep.subr.bf16.mxu0 %v4279_v49  ;;  %3135 = vmatprep.subr.bf16.mxu1 %v4281_v53  ;;  %v4539_v53 = vld [vmem:[%s5091_s3 + $0x1c0] sm:$0xff]  }
 0x1da   :  { %2963 = vmatmul.mubr.bf16.vlgmr.msra.gmra.mrb[4].mxu0 %v4834_v0  ;;  %3127 = vmatmul.mubr.bf16.vlgmr.msra.gmra.mrb[4].mxu1 %v4834_v0  ;;  %v4510_v0 = vld [vmem:[%s5091_s3 + $0x48] sm:$0xff]  }
 0x1db   :  { %2972 = vmatpush1.bf16.msra.mxu0 %v4278_v31  ;;  %3136 = vmatpush1.bf16.msra.mxu1 %v4280_v25  ;;  %v4540_v31 = vld [vmem:[%s5091_s3 + $0x100] sm:$0xff]  }
 0x1dc   :  { %3003 = vmatprep.mubr.bf16.mxu0 %v4695_v38  ;;  %3167 = vmatprep.mubr.bf16.mxu1 %v4695_v38  ;;  %v4512_v38 = vld [vmem:[%s5091_s3 + $0x8] sm:$0xff]  }
 0x1dd   :  { %4351 = vmatprep.subr.bf16.mxu0 %v4506_v50  ;;  %4373 = vmatprep.subr.bf16.mxu1 %v4507_v51  ;;  %v4541_v50 = vld [vmem:[%s5091_s3 + $0x180] sm:$0xff]   ;;  %v4542_v51 = vld [vmem:[%s5091_s3 + $0x148] sm:$0xff]  }
 0x1e6   :  { %4284 = vmatmul.mubr.msk.bf16.vlgmr.msra.gmra.mrb[4].mxu0 %vm2516_vm0, %v4842_v12  ;;  %4285 = vmatmul.mubr.msk.bf16.vlgmr.msra.gmra.mrb[4].mxu1 %vm2516_vm0, %v4842_v12  ;;  %v530_v12 = vsub.s32 3, %v4775_v44 }
 0x1e7   :  { %4352 = vmatpush3.bf16.msra.mxu0 %v4508_v52  ;;  %4374 = vmatpush3.bf16.msra.mxu1 %v4509_v54  ;;  %v4543_v54 = vld [vmem:[%s5091_s3 + $0x1c8] sm:$0xff]  }
 0x1e8   :  { %4353 = vmatprep.subr.bf16.mxu0 %v4510_v0  ;;  %4375 = vmatprep.subr.bf16.mxu1 %v4511_v55  ;;  %v531_v1 = vrot.slane %v4894_v60, %v530_v12  ;;  %v4544_v0 = vld [vmem:[%s5091_s3 + $0x108] sm:$0xff]   ;;  %v4550_v12 = vld [vmem:[%s5091_s3 + $0x158] sm:$0xff]  }
 0x1e9   :  { %v4545_v55 = vld [vmem:[%s5091_s3 + $0x188] sm:$0xff]  }
 0x1eb   :  { %4354 = vmatpush3.bf16.msra.mxu0 %v4512_v38  ;;  %4376 = vmatpush3.bf16.msra.mxu1 %v4513_v58  ;;  %v4546_v38 = vld [vmem:[%s5091_s3 + $0x150] sm:$0xff]  }
 0x1ec   :  { %4355 = vmatprep.subr.bf16.mxu0 %v4514_v16  ;;  %4377 = vmatprep.subr.bf16.mxu1 %v4515_v35  ;;  %v4548_v58 = vld [vmem:[%s5091_s3 + $0x110] sm:$0xff]   ;;  %v4551_v35 = vld [vmem:[%s5091_s3 + $0x1d8] sm:$0xff]  }
 0x1ed   :  { %v2677_v3 = vpop.f32.mrb[0].mxu0  ;;  %v2841_v5 = vpop.f32.mrb[0].mxu1  ;;  %v4549_v16 = vld [vmem:[%s5091_s3 + $0x190] sm:$0xff]  }
 0x1ee   :  { %v2679_v6 = vpop.f32.mrb[1].mxu0  ;;  %v2843_v8 = vpop.f32.mrb[1].mxu1  ;;  %v4439_v37 = vadd.f32 %v2677_v3, %v519_v30  ;;  %v4441_v41 = vadd.f32 %v2841_v5, %v527_v34  ;;  %v4557_v3 = vld [vmem:[%s5091_s3 + $0x1a0] sm:$0xff]   ;;  %v4559_v5 = vld [vmem:[%s5091_s3 + $0x1e8] sm:$0xff]  }
 0x1ef   :  { %4356 = vmatpush3.bf16.msra.mxu0 %v4516_v61  ;;  %v4440_v7 = vadd.f32 %v2679_v6, %v523_v48  ;;  %v2681_v56 = vpop.f32.mrb[2].mxu0  ;;  %4378 = vmatpush3.bf16.msra.mxu1 %v4517_v62  ;;  %v4442_v11 = vadd.f32 %v2843_v8, %v531_v1  ;;  %v2845_v13 = vpop.f32.mrb[2].mxu1  ;;  %v4552_v61 = vld [vmem:[%s5091_s3 + $0x118] sm:$0xff]   ;;  %v4554_v62 = vld [vmem:[%s5091_s3 + $0x160] sm:$0xff]   ;;  %v4560_v6 = vld [vmem:[%s5091_s3 + $0x128] sm:$0xff]  }
 0x1f0   :  { %v2682_v14 = vpop.f32.mrb[3].mxu0  ;;  %4357 = vmatprep.subr.bf16.mxu0 %v4518_v2  ;;  %v2846_v19 = vpop.f32.mrb[3].mxu1  ;;  %4379 = vmatprep.subr.bf16.mxu1 %v4519_v4  ;;  %v3176_v9 = vmax.f32 %v4439_v37, 0.0  ;;  %v3178_v49 = vmax.f32 %v4441_v41, 0.0  ;;  %v4553_v48 = vld [vmem:[%s5091_s3 + $0x198] sm:$0xff]   ;;  %v4555_v1 = vld [vmem:[%s5091_s3 + $0x1e0] sm:$0xff]  }
 0x1f1   :  { %v3177_v18 = vmax.f32 %v4440_v7, 0.0  ;;  %v3179_v20 = vmax.f32 %v4442_v11, 0.0  ;;  %v4556_v2 = vld [vmem:[%s5091_s3 + $0x120] sm:$0xff]   ;;  %v4558_v4 = vld [vmem:[%s5091_s3 + $0x168] sm:$0xff]   ;;  %v4562_v8 = vld [vmem:[%s5091_s3 + $0x170] sm:$0xff]   ;;  %v542_v19 = vsub.s32 6, %v4775_v44 }
 0x1f2   :  { %v3184_v25 = vpack.c.bf16 %v3176_v9, %v3176_v9  ;;  %v3186_v52 = vpack.c.bf16 %v3178_v49, %v3178_v49  ;;  %v4561_v7 = vld [vmem:[%s5091_s3 + $0x1a8] sm:$0xff]   ;;  %v4563_v56 = vld [vmem:[%s5091_s3 + $0x1f0] sm:$0xff]   ;;  %v4566_v13 = vld [vmem:[%s5091_s3 + $0x178] sm:$0xff]  }
 0x1f3   :  { %v3185_v21 = vpack.c.bf16 %v3177_v18, %v3177_v18  ;;  %4358 = vmatpush3.bf16.msra.mxu0 %v4520_v10  ;;  %v3187_v23 = vpack.c.bf16 %v3179_v20, %v3179_v20  ;;  %4380 = vmatpush3.bf16.msra.mxu1 %v4521_v15  ;;  %v4564_v10 = vld [vmem:[%s5091_s3 + $0x130] sm:$0xff]   ;;  %v4567_v14 = vld [vmem:[%s5091_s3 + $0x1f8] sm:$0xff]   ;;  %v534_v18 = vsub.s32 4, %v4775_v44  ;;  %v546_v20 = vsub.s32 7, %v4775_v44 }
 0x1f4   :  { %4359 = vmatprep.subr.bf16.mxu0 %v4522_v17  ;;  %4381 = vmatprep.subr.bf16.mxu1 %v4523_v59  ;;  %v4565_v11 = vld [vmem:[%s5091_s3 + $0x1b0] sm:$0xff]   ;;  %v4568_v15 = vld [vmem:[%s5091_s3 + $0x138] sm:$0xff]   ;;  %v538_v59 = vsub.s32 5, %v4775_v44 }
 0x1f5   :  { %3743 = vmatprep.mubr.bf16.mxu0 %v3185_v21  ;;  %3783 = vmatprep.mubr.bf16.mxu1 %v3187_v23  ;;  %v4569_v17 = vld [vmem:[%s5091_s3 + $0x1b8] sm:$0xff]   ;;  %v535_v21 = vrot.slane %v4894_v60, %v534_v18  ;;  %v547_v23 = vrot.slane %v4894_v60, %v546_v20  ;;  %v4286_v49 = vld [vmem:[#allocation8] ss:$0 sm:$0xff]  ;;  %s4696_s3 = smov [#allocation10]  }
 0x1f6   :  { %v539_v47 = vrot.slane %v4894_v60, %v538_v59  ;;  %s3879_s26 = sshll.u32 %s4696_s3, 4  ;;  %s3880_s26 = int_to_ptr.vmem [resolvable:$true] %s3879_s26 }
 0x1f7   :  { %4360 = vmatpush3.bf16.msra.mxu0 %v4524_v22  ;;  %4382 = vmatpush3.bf16.msra.mxu1 %v4525_v24  ;;  %v543_v22 = vrot.slane %v4894_v60, %v542_v19  ;;  %s4658_s27 = scalar_lea.vmem %s3880_s26, 32  ;;  %p4663_p5 = scmp.lt.s32.totalorder %s3880_s26, %s3880_s26 }
 0x1f8   :  { %4361 = vmatprep.subr.bf16.mxu0 %v4526_v26  ;;  %4383 = vmatprep.subr.bf16.mxu1 %v4527_v28  ;;  %p4659_p4 = scmp.ne.s32.totalorder %s3880_s26, %s4658_s27  ;;  %p4664_p6 = scmp.lt.s32.totalorder %s4658_s27, %s4658_s27 }
 0x1fa   :  { %p4665_p7 = por %p4664_p6, %p4663_p5 }
 0x1fb   :  { %4362 = vmatpush3.bf16.msra.mxu0 %v4528_v29  ;;  %4384 = vmatpush3.bf16.msra.mxu1 %v4529_v32 }
 0x1fc   :  { %4363 = vmatprep.subr.bf16.mxu0 %v4530_v33  ;;  %4385 = vmatprep.subr.bf16.mxu1 %v4531_v63  ;;  %p4666_p8 = pnand %p4665_p7, %p4659_p4 }
 0x1ff   :  { %4364 = vmatpush3.bf16.msra.mxu0 %v4532_v36  ;;  %4386 = vmatpush3.bf16.msra.mxu1 %v4533_v39 }
 0x200   :  { %4365 = vmatprep.subr.bf16.mxu0 %v4534_v40  ;;  %4387 = vmatprep.subr.bf16.mxu1 %v4535_v42 }
 0x203   :  { %4366 = vmatpush3.bf16.msra.mxu0 %v4536_v43  ;;  %4388 = vmatpush3.bf16.msra.mxu1 %v4537_v45 }
 0x204   :  { %4395 = vmatprep.subr.bf16.mxu0 %v4538_v46  ;;  %4417 = vmatprep.subr.bf16.mxu1 %v4539_v53 }
 0x206   :  { %3744 = vmatmul.mubr.bf16.vlgmr.msra.gmra.mrb[8].mxu0 %v3184_v25  ;;  %3784 = vmatmul.mubr.bf16.vlgmr.msra.gmra.mrb[8].mxu1 %v3186_v52 }
 0x207   :  { %4396 = vmatpush3.bf16.msra.mxu0 %v4540_v31  ;;  %4418 = vmatpush3.bf16.msra.mxu1 %v4541_v50 }
 0x208   :  { %4397 = vmatprep.subr.bf16.mxu0 %v4542_v51  ;;  %4419 = vmatprep.subr.bf16.mxu1 %v4543_v54 }
 0x20b   :  { %4398 = vmatpush3.bf16.msra.mxu0 %v4544_v0  ;;  %4420 = vmatpush3.bf16.msra.mxu1 %v4545_v55 }
 0x20c   :  { %4399 = vmatprep.subr.bf16.mxu0 %v4546_v38  ;;  %4421 = vmatprep.subr.bf16.mxu1 %v4547_v57 }
 0x20f   :  { %4400 = vmatpush3.bf16.msra.mxu0 %v4548_v58  ;;  %4422 = vmatpush3.bf16.msra.mxu1 %v4549_v16 }
 0x210   :  { %4401 = vmatprep.subr.bf16.mxu0 %v4550_v12  ;;  %4423 = vmatprep.subr.bf16.mxu1 %v4551_v35 }
 0x213   :  { %4402 = vmatpush3.bf16.msra.mxu0 %v4552_v61  ;;  %4424 = vmatpush3.bf16.msra.mxu1 %v4553_v48 }
 0x214   :  { %4403 = vmatprep.subr.bf16.mxu0 %v4554_v62  ;;  %4425 = vmatprep.subr.bf16.mxu1 %v4555_v1 }
 0x217   :  { %4404 = vmatpush3.bf16.msra.mxu0 %v4556_v2  ;;  %4426 = vmatpush3.bf16.msra.mxu1 %v4557_v3 }
 0x218   :  { %4405 = vmatprep.subr.bf16.mxu0 %v4558_v4  ;;  %4427 = vmatprep.subr.bf16.mxu1 %v4559_v5 }
 0x21b   :  { %4406 = vmatpush3.bf16.msra.mxu0 %v4560_v6  ;;  %4428 = vmatpush3.bf16.msra.mxu1 %v4561_v7 }
 0x21c   :  { %4407 = vmatprep.subr.bf16.mxu0 %v4562_v8  ;;  %4429 = vmatprep.subr.bf16.mxu1 %v4563_v56 }
 0x21f   :  { %4408 = vmatpush3.bf16.msra.mxu0 %v4564_v10  ;;  %4430 = vmatpush3.bf16.msra.mxu1 %v4565_v11 }
 0x220   :  { %4409 = vmatprep.subr.bf16.mxu0 %v4566_v13  ;;  %4431 = vmatprep.subr.bf16.mxu1 %v4567_v14 }
 0x223   :  { %4410 = vmatpush3.bf16.msra.mxu0 %v4568_v15  ;;  %4432 = vmatpush3.bf16.msra.mxu1 %v4569_v17 }
 0x2b9   :  { %v3005_v24 = vpop.f32.mrb[4].mxu0  ;;  %v3169_v27 = vpop.f32.mrb[4].mxu1 }
 0x2ba   :  { %v4443_v26 = vadd.f32 %v3005_v24, %v535_v21  ;;  %v3007_v28 = vpop.f32.mrb[5].mxu0  ;;  %v4445_v29 = vadd.f32 %v3169_v27, %v543_v22  ;;  %v3171_v32 = vpop.f32.mrb[5].mxu1 }
 0x2bb   :  { %v4444_v30 = vadd.f32 %v3007_v28, %v539_v47  ;;  %v3009_v33 = vpop.f32.mrb[6].mxu0  ;;  %v4446_v63 = vadd.f32 %v3171_v32, %v547_v23  ;;  %v3173_v36 = vpop.f32.mrb[6].mxu1 }
 0x2bc   :  { %v3180_v34 = vmax.f32 %v4443_v26, 0.0  ;;  %v3010_v44 = vpop.f32.mrb[7].mxu0  ;;  %v3182_v37 = vmax.f32 %v4445_v29, 0.0  ;;  %v3174_v40 = vpop.f32.mrb[7].mxu1 }
 0x2bd   :  { %v3181_v39 = vmax.f32 %v4444_v30, 0.0  ;;  %v3183_v41 = vmax.f32 %v4446_v63, 0.0 }
 0x2be   :  { %v3188_v43 = vpack.c.bf16 %v3180_v34, %v3180_v34  ;;  %v3190_v60 = vpack.c.bf16 %v3182_v37, %v3182_v37 }
 0x2bf   :  { %v3189_v42 = vpack.c.bf16 %v3181_v39, %v3181_v39  ;;  %v3191_v9 = vpack.c.bf16 %v3183_v41, %v3183_v41 }
 0x2c1   :  { %3823 = vmatprep.mubr.bf16.mxu0 %v3189_v42  ;;  %3863 = vmatprep.mubr.bf16.mxu1 %v3191_v9 }
 0x2c2   :  { %3824 = vmatmul.mubr.bf16.vlgmr.msra.gmra.mrb[12].mxu0 %v3188_v43  ;;  %3864 = vmatmul.mubr.bf16.vlgmr.msra.gmra.mrb[12].mxu1 %v3190_v60 }
 0x2d9   :  { %v4367_v45 = vpop.f32.mrb[8].mxu0  ;;  %v4389_v46 = vpop.f32.mrb[8].mxu1 }
 0x2da   :  { %v4368_v53 = vpop.f32.mrb[9].mxu0  ;;  %v4390_v25 = vpop.f32.mrb[9].mxu1 }
 0x2db   :  { %v4369_v31 = vadd.f32 %v4368_v53, %v4367_v45  ;;  %v4370_v50 = vpop.f32.mrb[10].mxu0  ;;  %v4391_v51 = vadd.f32 %v4390_v25, %v4389_v46  ;;  %v4392_v52 = vpop.f32.mrb[10].mxu1 }
 0x2dc   :  { %v4371_v54 = vpop.f32.mrb[11].mxu0  ;;  %v4393_v55 = vpop.f32.mrb[11].mxu1 }
 0x2dd   :  { %v3746_v0 = vadd.f32 %v4369_v31, %v4286_v49 }
 0x2df   :  { %v3786_v38 = vadd.f32 %v4391_v51, %v3746_v0 }
 0x395   :  { %v4411_v57 = vpop.f32.mrb[12].mxu0  ;;  %v4433_v58 = vpop.f32.mrb[12].mxu1 }
 0x396   :  { %v4412_v16 = vpop.f32.mrb[13].mxu0  ;;  %v4434_v35 = vpop.f32.mrb[13].mxu1 }
 0x397   :  { %v4413_v12 = vadd.f32 %v4412_v16, %v4411_v57  ;;  %v4414_v61 = vpop.f32.mrb[14].mxu0  ;;  %v4435_v48 = vadd.f32 %v4434_v35, %v4433_v58  ;;  %v4436_v62 = vpop.f32.mrb[14].mxu1 }
 0x398   :  { %v4415_v1 = vpop.f32.mrb[15].mxu0  ;;  %v4437_v3 = vpop.f32.mrb[15].mxu1 }
 0x399   :  { %v3826_v2 = vadd.f32 %v4413_v12, %v3786_v38 }
 0x39b   :  { %v3866_v4 = vadd.f32 %v4435_v48, %v3826_v2 }
 0x39d   :  { %3872 = vst.msk [vmem:[#allocation10] sm:$0x3] %vm3871_vm1, %v3866_v4 }
 0x39e   :  { %4669 = shalt.err (!%p4666_p8)
}
 0x39f   :  { %s4670_s29 = scalar_lea.hbm %s5093_s5, 32 }
 0x3a0   :  { %p4671_p9 = scmp.ne.s32.totalorder %s5093_s5, %s4670_s29  ;;  %p4674_p10 = scmp.lt.u32.totalorder %s4670_s29, %s5093_s5 }
 0x3a2   :  { %p4676_p11 = pnand %p4674_p10, %p4671_p9 }
 0x3a4   :  { %4679 = shalt.err (!%p4676_p11)
}
 0x3a5   :  { %3882 = dma.vmem_to_hbm [thread:$0]  %s3880_s26, 32, %s5093_s5, [#allocation4]  }
 0x3a6   :  { %4686 = dma.done.wait [#allocation4], 32  }
 0x3a7   :  { %4687 = vsyncadd [#allocation4], 4294967264 }
 0x3a8   :  { %3886 = vsyncpa [#allocation3], 1 }
 0x3a9   :  { %3887 = vsyncpa [#allocation6], 1 }
 0x3aa   :  { %3888 = vsyncpa [#allocation9], 1 }
 0x3ab   :  { %3889 = vsyncpa [#allocation4], 1 }

</bundles_post_ra>
